<compile_context>
chip_gen: v6e
topology: v6e:2x2x1
jax: 0.10.0
libtpu: 0.0.40
codegen_flags: <defaults>
</compile_context>

<pallas_src>
import functools

import jax
import jax.numpy as jnp
from jax.experimental import pallas as pl
from jax.experimental.pallas import tpu as pltpu


# ----------------------------------------------------------------------------
# Static shape helpers (mirror _derive_activation_size of the PyTorch module).
# ----------------------------------------------------------------------------
def _conv_output_sizes(h, w):
    oh1, ow1 = (h - 8) // 4 + 1, (w - 8) // 4 + 1       # Conv2d(k=8, s=4)
    oh2, ow2 = (oh1 - 4) // 2 + 1, (ow1 - 4) // 2 + 1   # Conv2d(k=4, s=2)
    oh3, ow3 = oh2 - 3 + 1, ow2 - 3 + 1                 # Conv2d(k=3, s=1)
    return (oh1, ow1), (oh2, ow2), (oh3, ow3)


def _derive_feature_size(h, w):
    (_, _), (_, _), (oh3, ow3) = _conv_output_sizes(h, w)
    return 64 * oh3 * ow3


# ----------------------------------------------------------------------------
# The single fused Pallas kernel: 5 GEMMs (conv1, conv2, conv3, fc1, fc2) with
# in-kernel im2col patch assembly into VMEM scratch between the conv GEMMs.
# ----------------------------------------------------------------------------
def _fused_qnet_kernel(p1_ref, w1_ref, b1_ref, w2_ref, b2_ref, w3_ref, b3_ref,
                       fc1w_ref, fc1b_ref, fc2w_ref, fc2b_ref, out_ref,
                       p2_ref, p3_ref, ft_ref,
                       *, B, OH1, OW1, OH2, OW2, OH3, OW3, C1, C2, C3):
    f32 = jnp.float32
    bf16 = jnp.bfloat16
    owb1 = OW1 // 2

    # ---- conv1: one dense GEMM over the pre-built im2col patches -------------
    # p1 row index = (((ow1 % 2) * OH1 + oh1) * owb1 + ow1 // 2) * B + b
    a1 = jnp.dot(p1_ref[...], w1_ref[...], preferred_element_type=f32)
    a1 = jnp.maximum(a1 + b1_ref[...], 0.0)             # f32 [2*OH1*owb1*B, C1]

    # ---- conv2 (kernel 4x4, stride 2): im2col into scratch, then ONE GEMM ----
    # For kernel offset (i, j) and output row r, the conv1 activations needed for
    # all (output col s, batch b) form ONE contiguous row range of a1, which is
    # written at a static (row, column-block) offset of the patch matrix.
    rb2 = OW2 * B
    for i in range(4):
        for j in range(4):
            col = (i * 4 + j) * C1
            for r in range(OH2):
                src = (((j % 2) * OH1 + (2 * r + i)) * owb1 + (j // 2)) * B
                p2_ref[r * rb2:(r + 1) * rb2, col:col + C1] = a1[src:src + rb2, :]
    a2 = jnp.dot(p2_ref[...].astype(bf16), w2_ref[...], preferred_element_type=f32)
    a2 = jnp.maximum(a2 + b2_ref[...], 0.0)              # f32 [OH2*OW2*B, C2]
    # a2 row index = (oh2 * OW2 + ow2) * B + b

    # ---- conv3 (kernel 3x3, stride 1): im2col into scratch, then ONE GEMM ----
    rb3 = OW3 * B
    for i in range(3):
        for j in range(3):
            col = (i * 3 + j) * C2
            for r in range(OH3):
                src = ((r + i) * OW2 + j) * B
                p3_ref[r * rb3:(r + 1) * rb3, col:col + C2] = a2[src:src + rb3, :]
    a3 = jnp.dot(p3_ref[...].astype(bf16), w3_ref[...], preferred_element_type=f32)
    a3 = jnp.maximum(a3 + b3_ref[...], 0.0)              # f32 [OH3*OW3*B, C3]
    # a3 row index = (oh3 * OW3 + ow3) * B + b

    # ---- flatten + fc1 (+ReLU): single GEMM --------------------------------
    # torch Flatten order (c, h, w) is folded into fc1w's row order (idx, c).
    for idx in range(OH3 * OW3):
        ft_ref[:, idx * C3:(idx + 1) * C3] = a3[idx * B:(idx + 1) * B, :]
    h = jnp.dot(ft_ref[...].astype(bf16), fc1w_ref[...], preferred_element_type=f32)
    h = jnp.maximum(h + fc1b_ref[...], 0.0)              # f32 [B, hidden]

    # ---- fc2 (output padded to 128 lanes; sliced outside the kernel) --------
    q = jnp.dot(h.astype(bf16), fc2w_ref[...], preferred_element_type=f32)
    out_ref[...] = (q + fc2b_ref[...]).astype(out_ref.dtype)


# ----------------------------------------------------------------------------
# XLA-side prep: conv1 im2col of the network input (once per call, ~64 KiB bf16).
# ----------------------------------------------------------------------------
def _build_conv1_patches(obs, oh1, ow1):
    """obs [B, C, H, W] (NCHW) -> [2*oh1*(ow1//2)*B, C*8*8] bf16.

    Row order (ow1 % 2, oh1, ow1 // 2, b); column order (c, i, j), matching
    conv1_w.reshape(32, -1).T."""
    B, C, _, _ = obs.shape
    cols = []
    for i in range(8):
        for j in range(8):
            cols.append(obs[:, :, i:i + 4 * oh1:4, j:j + 4 * ow1:4])  # [B, C, oh1, ow1]
    p = jnp.stack(cols, axis=0).reshape(8, 8, B, C, oh1, ow1)
    p = p.reshape(8, 8, B, C, oh1, ow1 // 2, 2)          # split ow1 -> (ow1//2, ow1%2)
    p = jnp.transpose(p, (6, 4, 5, 2, 3, 0, 1))          # [pw, oh, owb, b, c, i, j]
    return p.reshape(2 * oh1 * (ow1 // 2) * B, C * 64).astype(jnp.bfloat16)


# ----------------------------------------------------------------------------
# One-time weight preparation (outside the jitted forward): flatten / transpose /
# pad, and cast all matmul weights to bf16 (biases stay f32).
# ----------------------------------------------------------------------------
def prepare_params(params, conv3_spatial):
    oh3, ow3 = conv3_spatial
    f32, bf16 = jnp.float32, jnp.bfloat16
    c1 = params["conv1_w"].shape[0]
    c2 = params["conv2_w"].shape[0]
    c3 = params["conv3_w"].shape[0]
    hidden = params["fc1_w"].shape[0]
    n_actions = params["fc2_w"].shape[0]
    n_pad = ((n_actions + 127) // 128) * 128             # lane-dense fc2 output

    fc2_w = jnp.zeros((hidden, n_pad), f32).at[:, :n_actions].set(
        params["fc2_w"].T.astype(f32))
    fc2_b = jnp.zeros((1, n_pad), f32).at[0, :n_actions].set(
        params["fc2_b"].astype(f32))

    return {
        # conv1: [Cin*64, C1]
        "w1": params["conv1_w"].reshape(c1, -1).T.astype(bf16),
        "b1": params["conv1_b"].reshape(1, c1).astype(f32),
        # conv2 flattened for a single im2col GEMM: [16*C1, C2], row = (i*4+j)*C1+c1
        "w2": jnp.transpose(params["conv2_w"], (2, 3, 1, 0)).reshape(16 * c1, c2).astype(bf16),
        "b2": params["conv2_b"].reshape(1, c2).astype(f32),
        # conv3 flattened: [9*C2, C3], row = (i*3+j)*C2+c2
        "w3": jnp.transpose(params["conv3_w"], (2, 3, 1, 0)).reshape(9 * c2, c3).astype(bf16),
        "b3": params["conv3_b"].reshape(1, c3).astype(f32),
        # fc1 flattened: [OH3*OW3*C3, hidden], row = idx*C3 + c (torch order folded in)
        "fc1_w": jnp.transpose(params["fc1_w"].reshape(hidden, c3, oh3 * ow3),
                               (2, 1, 0)).reshape(oh3 * ow3 * c3, hidden).astype(bf16),
        "fc1_b": params["fc1_b"].reshape(1, hidden).astype(f32),
        # fc2 zero-padded to a multiple of 128 output columns
        "fc2_w": fc2_w.astype(bf16),
        "fc2_b": fc2_b,
    }


# ----------------------------------------------------------------------------
# QNetworkCNN forward (observation is NCHW, as in the PyTorch forward).
# ----------------------------------------------------------------------------
def qnetwork_cnn_forward(prepared, observation, *, n_actions):
    B, C, H, W = observation.shape
    (oh1, ow1), (oh2, ow2), (oh3, ow3) = _conv_output_sizes(H, W)
    assert ow1 % 2 == 0, "conv1 output width must be even for the fused kernel"
    assert oh3 >= 1 and ow3 >= 1, "observation too small for the conv stack"

    c1 = prepared["b1"].shape[1]
    c2 = prepared["b2"].shape[1]
    c3 = prepared["b3"].shape[1]
    n_pad = prepared["fc2_w"].shape[1]
    assert prepared["fc1_w"].shape[0] == oh3 * ow3 * c3

    patches = _build_conv1_patches(observation, oh1, ow1)   # bf16

    kernel = functools.partial(
        _fused_qnet_kernel,
        B=B, OH1=oh1, OW1=ow1, OH2=oh2, OW2=ow2, OH3=oh3, OW3=ow3,
        C1=c1, C2=c2, C3=c3)

    args = (patches,
            prepared["w1"], prepared["b1"],
            prepared["w2"], prepared["b2"],
            prepared["w3"], prepared["b3"],
            prepared["fc1_w"], prepared["fc1_b"],
            prepared["fc2_w"], prepared["fc2_b"])
    vmem_specs = [pl.BlockSpec(memory_space=pltpu.MemorySpace.VMEM) for _ in args]

    q_padded = pl.pallas_call(
        kernel,
        out_shape=jax.ShapeDtypeStruct((B, n_pad), jnp.float32),
        in_specs=vmem_specs,
        out_specs=pl.BlockSpec(memory_space=pltpu.MemorySpace.VMEM),
        scratch_shapes=[
            pltpu.VMEM((oh2 * ow2 * B, 16 * c1), jnp.float32),   # conv2 im2col
            pltpu.VMEM((oh3 * ow3 * B, 9 * c2), jnp.float32),    # conv3 im2col
            pltpu.VMEM((B, oh3 * ow3 * c3), jnp.float32),        # flatten for fc1
        ],
    )(*args)
    return q_padded[:, :n_actions]


# ----------------------------------------------------------------------------
# Deterministic parameter construction (torch layouts / shapes) + JAX reference.
# ----------------------------------------------------------------------------
def init_params(key, in_channels, feature_size, n_actions):
    def uniform(k, shape, fan_in):
        bound = 1.0 / jnp.sqrt(jnp.float32(fan_in))
        return jax.random.uniform(k, shape, jnp.float32, -bound, bound)

    ks = jax.random.split(key, 10)
    p = {}
    p["conv1_w"] = uniform(ks[0], (32, in_channels, 8, 8), in_channels * 8 * 8)
    p["conv1_b"] = uniform(ks[1], (32,), in_channels * 8 * 8)
    p["conv2_w"] = uniform(ks[2], (64, 32, 4, 4), 32 * 4 * 4)
    p["conv2_b"] = uniform(ks[3], (64,), 32 * 4 * 4)
    p["conv3_w"] = uniform(ks[4], (64, 64, 3, 3), 64 * 3 * 3)
    p["conv3_b"] = uniform(ks[5], (64,), 64 * 3 * 3)
    p["fc1_w"] = uniform(ks[6], (512, feature_size), feature_size)   # torch Linear: [out, in]
    p["fc1_b"] = uniform(ks[7], (512,), feature_size)
    p["fc2_w"] = uniform(ks[8], (n_actions, 512), 512)
    p["fc2_b"] = uniform(ks[9], (n_actions,), 512)
    return p


def _reference_forward(params, obs):
    def conv(x, w, b, stride):
        y = jax.lax.conv_general_dilated(
            x, w, (stride, stride), "VALID",
            dimension_numbers=("NCHW", "OIHW", "NCHW"))
        return jax.nn.relu(y + b.reshape(1, -1, 1, 1))

    x = conv(obs, params["conv1_w"], params["conv1_b"], 4)
    x = conv(x, params["conv2_w"], params["conv2_b"], 2)
    x = conv(x, params["conv3_w"], params["conv3_b"], 1)
    feats = x.reshape(x.shape[0], -1)                      # torch Flatten (NCHW order)
    h = jax.nn.relu(feats @ params["fc1_w"].T + params["fc1_b"])
    return h @ params["fc2_w"].T + params["fc2_b"]


if __name__ == "__main__":
    # observation_space.shape = (H, W, C) = (36, 36, 4); action_space.n = 6
    # (36 is the smallest spatial size for which the 8/4/3 conv stack is valid.)
    H, W, C = 36, 36, 4
    n_actions = 6
    batch = 2

    feature_size = _derive_feature_size(H, W)              # 64 for 36x36 input
    (_, _), (_, _), conv3_spatial = _conv_output_sizes(H, W)

    key = jax.random.PRNGKey(0)
    pkey, xkey = jax.random.split(key)
    params = init_params(pkey, C, feature_size, n_actions)
    prepared = prepare_params(params, conv3_spatial)       # one-time weight prep

    # forward() takes NCHW observations (PyTorch convention).
    x = jax.random.normal(xkey, (batch, C, H, W), dtype=jnp.float32)

    fwd = jax.jit(qnetwork_cnn_forward, static_argnames=("n_actions",))
    q_values = fwd(prepared, x, n_actions=n_actions)
    jax.block_until_ready(q_values)
    assert q_values.shape == (batch, n_actions), q_values.shape

    # Tolerance reflects bf16 MXU inputs (f32 accumulation) inside the kernel.
    q_ref = _reference_forward(params, x)
    if not jnp.allclose(q_values, q_ref, rtol=5e-2, atol=5e-2):
        raise AssertionError("fused Pallas kernel does not match JAX reference")

    print("KERNEL_OK")
</pallas_src>

<mosaic_0001>
module attributes {stable_mosaic.version = 11 : i64} {
  func.func @_fused_qnet_kernel(%arg0: memref<128x256xbf16, #tpu.memory_space<vmem>>, %arg1: memref<256x32xbf16, #tpu.memory_space<vmem>>, %arg2: memref<1x32xf32, #tpu.memory_space<vmem>>, %arg3: memref<512x64xbf16, #tpu.memory_space<vmem>>, %arg4: memref<1x64xf32, #tpu.memory_space<vmem>>, %arg5: memref<576x64xbf16, #tpu.memory_space<vmem>>, %arg6: memref<1x64xf32, #tpu.memory_space<vmem>>, %arg7: memref<64x512xbf16, #tpu.memory_space<vmem>>, %arg8: memref<1x512xf32, #tpu.memory_space<vmem>>, %arg9: memref<512x128xbf16, #tpu.memory_space<vmem>>, %arg10: memref<1x128xf32, #tpu.memory_space<vmem>>, %arg11: memref<2x128xf32, #tpu.memory_space<vmem>>, %arg12: memref<18x512xf32, #tpu.memory_space<vmem>>, %arg13: memref<2x576xf32, #tpu.memory_space<vmem>>, %arg14: memref<2x64xf32, #tpu.memory_space<vmem>>) attributes {dimension_semantics = [], scalar_prefetch = 0 : i64, scratch_operands = 3 : i64, tpu.core_type = #tpu.core_type<tc>} {
    %c0 = arith.constant 0 : index
    %c0_0 = arith.constant 0 : index
    %0 = vector.load %arg0[%c0, %c0_0] : memref<128x256xbf16, #tpu.memory_space<vmem>>, vector<128x256xbf16>
    %c0_1 = arith.constant 0 : index
    %c0_2 = arith.constant 0 : index
    %1 = vector.load %arg1[%c0_1, %c0_2] : memref<256x32xbf16, #tpu.memory_space<vmem>>, vector<256x32xbf16>
    %cst = arith.constant dense<0.000000e+00> : vector<128x32xf32>
    %2 = tpu.matmul %0, %1, %cst {dimension_numbers = #tpu.dot_dimension_numbers<[1], [0], [0], [1], [0, 0, 1, 1], [], []>} : vector<128x256xbf16>, vector<256x32xbf16>, vector<128x32xf32> -> vector<128x32xf32>
    %c0_3 = arith.constant 0 : index
    %c0_4 = arith.constant 0 : index
    %3 = vector.load %arg2[%c0_3, %c0_4] : memref<1x32xf32, #tpu.memory_space<vmem>>, vector<1x32xf32>
    %4 = vector.broadcast %3 : vector<1x32xf32> to vector<128x32xf32>
    %5 = arith.addf %2, %4 : vector<128x32xf32>
    %cst_5 = arith.constant 0.000000e+00 : f32
    %6 = vector.broadcast %cst_5 : f32 to vector<128x32xf32>
    %7 = arith.maximumf %5, %6 : vector<128x32xf32>
    %8 = vector.extract_strided_slice %7 {offsets = [0, 0], sizes = [6, 32], strides = [1, 1]} : vector<128x32xf32> to vector<6x32xf32>
    %c0_6 = arith.constant 0 : index
    %c0_7 = arith.constant 0 : index
    %9 = vector.load %arg12[%c0_6, %c0_7] : memref<18x512xf32, #tpu.memory_space<vmem>>, vector<6x32xf32>
    tpu.vector_store %arg12[%c0_6, %c0_7], %8 {strides = array<i32>} : memref<18x512xf32, #tpu.memory_space<vmem>>, vector<6x32xf32>,
    %10 = vector.extract_strided_slice %7 {offsets = [16, 0], sizes = [6, 32], strides = [1, 1]} : vector<128x32xf32> to vector<6x32xf32>
    %c6 = arith.constant 6 : index
    %c0_8 = arith.constant 0 : index
    %11 = vector.load %arg12[%c6, %c0_8] : memref<18x512xf32, #tpu.memory_space<vmem>>, vector<6x32xf32>
    tpu.vector_store %arg12[%c6, %c0_8], %10 {strides = array<i32>} : memref<18x512xf32, #tpu.memory_space<vmem>>, vector<6x32xf32>,
    %12 = vector.extract_strided_slice %7 {offsets = [32, 0], sizes = [6, 32], strides = [1, 1]} : vector<128x32xf32> to vector<6x32xf32>
    %c12 = arith.constant 12 : index
    %c0_9 = arith.constant 0 : index
    %13 = vector.load %arg12[%c12, %c0_9] : memref<18x512xf32, #tpu.memory_space<vmem>>, vector<6x32xf32>
    tpu.vector_store %arg12[%c12, %c0_9], %12 {strides = array<i32>} : memref<18x512xf32, #tpu.memory_space<vmem>>, vector<6x32xf32>,
    %14 = vector.extract_strided_slice %7 {offsets = [64, 0], sizes = [6, 32], strides = [1, 1]} : vector<128x32xf32> to vector<6x32xf32>
    %c0_10 = arith.constant 0 : index
    %c32 = arith.constant 32 : index
    %15 = vector.load %arg12[%c0_10, %c32] : memref<18x512xf32, #tpu.memory_space<vmem>>, vector<6x32xf32>
    tpu.vector_store %arg12[%c0_10, %c32], %14 {strides = array<i32>} : memref<18x512xf32, #tpu.memory_space<vmem>>, vector<6x32xf32>,
    %16 = vector.extract_strided_slice %7 {offsets = [80, 0], sizes = [6, 32], strides = [1, 1]} : vector<128x32xf32> to vector<6x32xf32>
    %c6_11 = arith.constant 6 : index
    %c32_12 = arith.constant 32 : index
    %17 = vector.load %arg12[%c6_11, %c32_12] : memref<18x512xf32, #tpu.memory_space<vmem>>, vector<6x32xf32>
    tpu.vector_store %arg12[%c6_11, %c32_12], %16 {strides = array<i32>} : memref<18x512xf32, #tpu.memory_space<vmem>>, vector<6x32xf32>,
    %18 = vector.extract_strided_slice %7 {offsets = [96, 0], sizes = [6, 32], strides = [1, 1]} : vector<128x32xf32> to vector<6x32xf32>
    %c12_13 = arith.constant 12 : index
    %c32_14 = arith.constant 32 : index
    %19 = vector.load %arg12[%c12_13, %c32_14] : memref<18x512xf32, #tpu.memory_space<vmem>>, vector<6x32xf32>
    tpu.vector_store %arg12[%c12_13, %c32_14], %18 {strides = array<i32>} : memref<18x512xf32, #tpu.memory_space<vmem>>, vector<6x32xf32>,
    %20 = vector.extract_strided_slice %7 {offsets = [2, 0], sizes = [6, 32], strides = [1, 1]} : vector<128x32xf32> to vector<6x32xf32>
    %c0_15 = arith.constant 0 : index
    %c64 = arith.constant 64 : index
    %21 = vector.load %arg12[%c0_15, %c64] : memref<18x512xf32, #tpu.memory_space<vmem>>, vector<6x32xf32>
    tpu.vector_store %arg12[%c0_15, %c64], %20 {strides = array<i32>} : memref<18x512xf32, #tpu.memory_space<vmem>>, vector<6x32xf32>,
    %22 = vector.extract_strided_slice %7 {offsets = [18, 0], sizes = [6, 32], strides = [1, 1]} : vector<128x32xf32> to vector<6x32xf32>
    %c6_16 = arith.constant 6 : index
    %c64_17 = arith.constant 64 : index
    %23 = vector.load %arg12[%c6_16, %c64_17] : memref<18x512xf32, #tpu.memory_space<vmem>>, vector<6x32xf32>
    tpu.vector_store %arg12[%c6_16, %c64_17], %22 {strides = array<i32>} : memref<18x512xf32, #tpu.memory_space<vmem>>, vector<6x32xf32>,
    %24 = vector.extract_strided_slice %7 {offsets = [34, 0], sizes = [6, 32], strides = [1, 1]} : vector<128x32xf32> to vector<6x32xf32>
    %c12_18 = arith.constant 12 : index
    %c64_19 = arith.constant 64 : index
    %25 = vector.load %arg12[%c12_18, %c64_19] : memref<18x512xf32, #tpu.memory_space<vmem>>, vector<6x32xf32>
    tpu.vector_store %arg12[%c12_18, %c64_19], %24 {strides = array<i32>} : memref<18x512xf32, #tpu.memory_space<vmem>>, vector<6x32xf32>,
    %26 = vector.extract_strided_slice %7 {offsets = [66, 0], sizes = [6, 32], strides = [1, 1]} : vector<128x32xf32> to vector<6x32xf32>
    %c0_20 = arith.constant 0 : index
    %c96 = arith.constant 96 : index
    %27 = vector.load %arg12[%c0_20, %c96] : memref<18x512xf32, #tpu.memory_space<vmem>>, vector<6x32xf32>
    tpu.vector_store %arg12[%c0_20, %c96], %26 {strides = array<i32>} : memref<18x512xf32, #tpu.memory_space<vmem>>, vector<6x32xf32>,
    %28 = vector.extract_strided_slice %7 {offsets = [82, 0], sizes = [6, 32], strides = [1, 1]} : vector<128x32xf32> to vector<6x32xf32>
    %c6_21 = arith.constant 6 : index
    %c96_22 = arith.constant 96 : index
    %29 = vector.load %arg12[%c6_21, %c96_22] : memref<18x512xf32, #tpu.memory_space<vmem>>, vector<6x32xf32>
    tpu.vector_store %arg12[%c6_21, %c96_22], %28 {strides = array<i32>} : memref<18x512xf32, #tpu.memory_space<vmem>>, vector<6x32xf32>,
    %30 = vector.extract_strided_slice %7 {offsets = [98, 0], sizes = [6, 32], strides = [1, 1]} : vector<128x32xf32> to vector<6x32xf32>
    %c12_23 = arith.constant 12 : index
    %c96_24 = arith.constant 96 : index
    %31 = vector.load %arg12[%c12_23, %c96_24] : memref<18x512xf32, #tpu.memory_space<vmem>>, vector<6x32xf32>
    tpu.vector_store %arg12[%c12_23, %c96_24], %30 {strides = array<i32>} : memref<18x512xf32, #tpu.memory_space<vmem>>, vector<6x32xf32>,
    %32 = vector.extract_strided_slice %7 {offsets = [8, 0], sizes = [6, 32], strides = [1, 1]} : vector<128x32xf32> to vector<6x32xf32>
    %c0_25 = arith.constant 0 : index
    %c128 = arith.constant 128 : index
    %33 = vector.load %arg12[%c0_25, %c128] : memref<18x512xf32, #tpu.memory_space<vmem>>, vector<6x32xf32>
    tpu.vector_store %arg12[%c0_25, %c128], %32 {strides = array<i32>} : memref<18x512xf32, #tpu.memory_space<vmem>>, vector<6x32xf32>,
    %34 = vector.extract_strided_slice %7 {offsets = [24, 0], sizes = [6, 32], strides = [1, 1]} : vector<128x32xf32> to vector<6x32xf32>
    %c6_26 = arith.constant 6 : index
    %c128_27 = arith.constant 128 : index
    %35 = vector.load %arg12[%c6_26, %c128_27] : memref<18x512xf32, #tpu.memory_space<vmem>>, vector<6x32xf32>
    tpu.vector_store %arg12[%c6_26, %c128_27], %34 {strides = array<i32>} : memref<18x512xf32, #tpu.memory_space<vmem>>, vector<6x32xf32>,
    %36 = vector.extract_strided_slice %7 {offsets = [40, 0], sizes = [6, 32], strides = [1, 1]} : vector<128x32xf32> to vector<6x32xf32>
    %c12_28 = arith.constant 12 : index
    %c128_29 = arith.constant 128 : index
    %37 = vector.load %arg12[%c12_28, %c128_29] : memref<18x512xf32, #tpu.memory_space<vmem>>, vector<6x32xf32>
    tpu.vector_store %arg12[%c12_28, %c128_29], %36 {strides = array<i32>} : memref<18x512xf32, #tpu.memory_space<vmem>>, vector<6x32xf32>,
    %38 = vector.extract_strided_slice %7 {offsets = [72, 0], sizes = [6, 32], strides = [1, 1]} : vector<128x32xf32> to vector<6x32xf32>
    %c0_30 = arith.constant 0 : index
    %c160 = arith.constant 160 : index
    %39 = vector.load %arg12[%c0_30, %c160] : memref<18x512xf32, #tpu.memory_space<vmem>>, vector<6x32xf32>
    tpu.vector_store %arg12[%c0_30, %c160], %38 {strides = array<i32>} : memref<18x512xf32, #tpu.memory_space<vmem>>, vector<6x32xf32>,
    %40 = vector.extract_strided_slice %7 {offsets = [88, 0], sizes = [6, 32], strides = [1, 1]} : vector<128x32xf32> to vector<6x32xf32>
    %c6_31 = arith.constant 6 : index
    %c160_32 = arith.constant 160 : index
    %41 = vector.load %arg12[%c6_31, %c160_32] : memref<18x512xf32, #tpu.memory_space<vmem>>, vector<6x32xf32>
    tpu.vector_store %arg12[%c6_31, %c160_32], %40 {strides = array<i32>} : memref<18x512xf32, #tpu.memory_space<vmem>>, vector<6x32xf32>,
    %42 = vector.extract_strided_slice %7 {offsets = [104, 0], sizes = [6, 32], strides = [1, 1]} : vector<128x32xf32> to vector<6x32xf32>
    %c12_33 = arith.constant 12 : index
    %c160_34 = arith.constant 160 : index
    %43 = vector.load %arg12[%c12_33, %c160_34] : memref<18x512xf32, #tpu.memory_space<vmem>>, vector<6x32xf32>
    tpu.vector_store %arg12[%c12_33, %c160_34], %42 {strides = array<i32>} : memref<18x512xf32, #tpu.memory_space<vmem>>, vector<6x32xf32>,
    %44 = vector.extract_strided_slice %7 {offsets = [10, 0], sizes = [6, 32], strides = [1, 1]} : vector<128x32xf32> to vector<6x32xf32>
    %c0_35 = arith.constant 0 : index
    %c192 = arith.constant 192 : index
    %45 = vector.load %arg12[%c0_35, %c192] : memref<18x512xf32, #tpu.memory_space<vmem>>, vector<6x32xf32>
    tpu.vector_store %arg12[%c0_35, %c192], %44 {strides = array<i32>} : memref<18x512xf32, #tpu.memory_space<vmem>>, vector<6x32xf32>,
    %46 = vector.extract_strided_slice %7 {offsets = [26, 0], sizes = [6, 32], strides = [1, 1]} : vector<128x32xf32> to vector<6x32xf32>
    %c6_36 = arith.constant 6 : index
    %c192_37 = arith.constant 192 : index
    %47 = vector.load %arg12[%c6_36, %c192_37] : memref<18x512xf32, #tpu.memory_space<vmem>>, vector<6x32xf32>
    tpu.vector_store %arg12[%c6_36, %c192_37], %46 {strides = array<i32>} : memref<18x512xf32, #tpu.memory_space<vmem>>, vector<6x32xf32>,
    %48 = vector.extract_strided_slice %7 {offsets = [42, 0], sizes = [6, 32], strides = [1, 1]} : vector<128x32xf32> to vector<6x32xf32>
    %c12_38 = arith.constant 12 : index
    %c192_39 = arith.constant 192 : index
    %49 = vector.load %arg12[%c12_38, %c192_39] : memref<18x512xf32, #tpu.memory_space<vmem>>, vector<6x32xf32>
    tpu.vector_store %arg12[%c12_38, %c192_39], %48 {strides = array<i32>} : memref<18x512xf32, #tpu.memory_space<vmem>>, vector<6x32xf32>,
    %50 = vector.extract_strided_slice %7 {offsets = [74, 0], sizes = [6, 32], strides = [1, 1]} : vector<128x32xf32> to vector<6x32xf32>
    %c0_40 = arith.constant 0 : index
    %c224 = arith.constant 224 : index
    %51 = vector.load %arg12[%c0_40, %c224] : memref<18x512xf32, #tpu.memory_space<vmem>>, vector<6x32xf32>
    tpu.vector_store %arg12[%c0_40, %c224], %50 {strides = array<i32>} : memref<18x512xf32, #tpu.memory_space<vmem>>, vector<6x32xf32>,
    %52 = vector.extract_strided_slice %7 {offsets = [90, 0], sizes = [6, 32], strides = [1, 1]} : vector<128x32xf32> to vector<6x32xf32>
    %c6_41 = arith.constant 6 : index
    %c224_42 = arith.constant 224 : index
    %53 = vector.load %arg12[%c6_41, %c224_42] : memref<18x512xf32, #tpu.memory_space<vmem>>, vector<6x32xf32>
    tpu.vector_store %arg12[%c6_41, %c224_42], %52 {strides = array<i32>} : memref<18x512xf32, #tpu.memory_space<vmem>>, vector<6x32xf32>,
    %54 = vector.extract_strided_slice %7 {offsets = [106, 0], sizes = [6, 32], strides = [1, 1]} : vector<128x32xf32> to vector<6x32xf32>
    %c12_43 = arith.constant 12 : index
    %c224_44 = arith.constant 224 : index
    %55 = vector.load %arg12[%c12_43, %c224_44] : memref<18x512xf32, #tpu.memory_space<vmem>>, vector<6x32xf32>
    tpu.vector_store %arg12[%c12_43, %c224_44], %54 {strides = array<i32>} : memref<18x512xf32, #tpu.memory_space<vmem>>, vector<6x32xf32>,
    %56 = vector.extract_strided_slice %7 {offsets = [16, 0], sizes = [6, 32], strides = [1, 1]} : vector<128x32xf32> to vector<6x32xf32>
    %c0_45 = arith.constant 0 : index
    %c256 = arith.constant 256 : index
    %57 = vector.load %arg12[%c0_45, %c256] : memref<18x512xf32, #tpu.memory_space<vmem>>, vector<6x32xf32>
    tpu.vector_store %arg12[%c0_45, %c256], %56 {strides = array<i32>} : memref<18x512xf32, #tpu.memory_space<vmem>>, vector<6x32xf32>,
    %58 = vector.extract_strided_slice %7 {offsets = [32, 0], sizes = [6, 32], strides = [1, 1]} : vector<128x32xf32> to vector<6x32xf32>
    %c6_46 = arith.constant 6 : index
    %c256_47 = arith.constant 256 : index
    %59 = vector.load %arg12[%c6_46, %c256_47] : memref<18x512xf32, #tpu.memory_space<vmem>>, vector<6x32xf32>
    tpu.vector_store %arg12[%c6_46, %c256_47], %58 {strides = array<i32>} : memref<18x512xf32, #tpu.memory_space<vmem>>, vector<6x32xf32>,
    %60 = vector.extract_strided_slice %7 {offsets = [48, 0], sizes = [6, 32], strides = [1, 1]} : vector<128x32xf32> to vector<6x32xf32>
    %c12_48 = arith.constant 12 : index
    %c256_49 = arith.constant 256 : index
    %61 = vector.load %arg12[%c12_48, %c256_49] : memref<18x512xf32, #tpu.memory_space<vmem>>, vector<6x32xf32>
    tpu.vector_store %arg12[%c12_48, %c256_49], %60 {strides = array<i32>} : memref<18x512xf32, #tpu.memory_space<vmem>>, vector<6x32xf32>,
    %62 = vector.extract_strided_slice %7 {offsets = [80, 0], sizes = [6, 32], strides = [1, 1]} : vector<128x32xf32> to vector<6x32xf32>
    %c0_50 = arith.constant 0 : index
    %c288 = arith.constant 288 : index
    %63 = vector.load %arg12[%c0_50, %c288] : memref<18x512xf32, #tpu.memory_space<vmem>>, vector<6x32xf32>
    tpu.vector_store %arg12[%c0_50, %c288], %62 {strides = array<i32>} : memref<18x512xf32, #tpu.memory_space<vmem>>, vector<6x32xf32>,
    %64 = vector.extract_strided_slice %7 {offsets = [96, 0], sizes = [6, 32], strides = [1, 1]} : vector<128x32xf32> to vector<6x32xf32>
    %c6_51 = arith.constant 6 : index
    %c288_52 = arith.constant 288 : index
    %65 = vector.load %arg12[%c6_51, %c288_52] : memref<18x512xf32, #tpu.memory_space<vmem>>, vector<6x32xf32>
    tpu.vector_store %arg12[%c6_51, %c288_52], %64 {strides = array<i32>} : memref<18x512xf32, #tpu.memory_space<vmem>>, vector<6x32xf32>,
    %66 = vector.extract_strided_slice %7 {offsets = [112, 0], sizes = [6, 32], strides = [1, 1]} : vector<128x32xf32> to vector<6x32xf32>
    %c12_53 = arith.constant 12 : index
    %c288_54 = arith.constant 288 : index
    %67 = vector.load %arg12[%c12_53, %c288_54] : memref<18x512xf32, #tpu.memory_space<vmem>>, vector<6x32xf32>
    tpu.vector_store %arg12[%c12_53, %c288_54], %66 {strides = array<i32>} : memref<18x512xf32, #tpu.memory_space<vmem>>, vector<6x32xf32>,
    %68 = vector.extract_strided_slice %7 {offsets = [18, 0], sizes = [6, 32], strides = [1, 1]} : vector<128x32xf32> to vector<6x32xf32>
    %c0_55 = arith.constant 0 : index
    %c320 = arith.constant 320 : index
    %69 = vector.load %arg12[%c0_55, %c320] : memref<18x512xf32, #tpu.memory_space<vmem>>, vector<6x32xf32>
    tpu.vector_store %arg12[%c0_55, %c320], %68 {strides = array<i32>} : memref<18x512xf32, #tpu.memory_space<vmem>>, vector<6x32xf32>,
    %70 = vector.extract_strided_slice %7 {offsets = [34, 0], sizes = [6, 32], strides = [1, 1]} : vector<128x32xf32> to vector<6x32xf32>
    %c6_56 = arith.constant 6 : index
    %c320_57 = arith.constant 320 : index
    %71 = vector.load %arg12[%c6_56, %c320_57] : memref<18x512xf32, #tpu.memory_space<vmem>>, vector<6x32xf32>
    tpu.vector_store %arg12[%c6_56, %c320_57], %70 {strides = array<i32>} : memref<18x512xf32, #tpu.memory_space<vmem>>, vector<6x32xf32>,
    %72 = vector.extract_strided_slice %7 {offsets = [50, 0], sizes = [6, 32], strides = [1, 1]} : vector<128x32xf32> to vector<6x32xf32>
    %c12_58 = arith.constant 12 : index
    %c320_59 = arith.constant 320 : index
    %73 = vector.load %arg12[%c12_58, %c320_59] : memref<18x512xf32, #tpu.memory_space<vmem>>, vector<6x32xf32>
    tpu.vector_store %arg12[%c12_58, %c320_59], %72 {strides = array<i32>} : memref<18x512xf32, #tpu.memory_space<vmem>>, vector<6x32xf32>,
    %74 = vector.extract_strided_slice %7 {offsets = [82, 0], sizes = [6, 32], strides = [1, 1]} : vector<128x32xf32> to vector<6x32xf32>
    %c0_60 = arith.constant 0 : index
    %c352 = arith.constant 352 : index
    %75 = vector.load %arg12[%c0_60, %c352] : memref<18x512xf32, #tpu.memory_space<vmem>>, vector<6x32xf32>
    tpu.vector_store %arg12[%c0_60, %c352], %74 {strides = array<i32>} : memref<18x512xf32, #tpu.memory_space<vmem>>, vector<6x32xf32>,
    %76 = vector.extract_strided_slice %7 {offsets = [98, 0], sizes = [6, 32], strides = [1, 1]} : vector<128x32xf32> to vector<6x32xf32>
    %c6_61 = arith.constant 6 : index
    %c352_62 = arith.constant 352 : index
    %77 = vector.load %arg12[%c6_61, %c352_62] : memref<18x512xf32, #tpu.memory_space<vmem>>, vector<6x32xf32>
    tpu.vector_store %arg12[%c6_61, %c352_62], %76 {strides = array<i32>} : memref<18x512xf32, #tpu.memory_space<vmem>>, vector<6x32xf32>,
    %78 = vector.extract_strided_slice %7 {offsets = [114, 0], sizes = [6, 32], strides = [1, 1]} : vector<128x32xf32> to vector<6x32xf32>
    %c12_63 = arith.constant 12 : index
    %c352_64 = arith.constant 352 : index
    %79 = vector.load %arg12[%c12_63, %c352_64] : memref<18x512xf32, #tpu.memory_space<vmem>>, vector<6x32xf32>
    tpu.vector_store %arg12[%c12_63, %c352_64], %78 {strides = array<i32>} : memref<18x512xf32, #tpu.memory_space<vmem>>, vector<6x32xf32>,
    %80 = vector.extract_strided_slice %7 {offsets = [24, 0], sizes = [6, 32], strides = [1, 1]} : vector<128x32xf32> to vector<6x32xf32>
    %c0_65 = arith.constant 0 : index
    %c384 = arith.constant 384 : index
    %81 = vector.load %arg12[%c0_65, %c384] : memref<18x512xf32, #tpu.memory_space<vmem>>, vector<6x32xf32>
    tpu.vector_store %arg12[%c0_65, %c384], %80 {strides = array<i32>} : memref<18x512xf32, #tpu.memory_space<vmem>>, vector<6x32xf32>,
    %82 = vector.extract_strided_slice %7 {offsets = [40, 0], sizes = [6, 32], strides = [1, 1]} : vector<128x32xf32> to vector<6x32xf32>
    %c6_66 = arith.constant 6 : index
    %c384_67 = arith.constant 384 : index
    %83 = vector.load %arg12[%c6_66, %c384_67] : memref<18x512xf32, #tpu.memory_space<vmem>>, vector<6x32xf32>
    tpu.vector_store %arg12[%c6_66, %c384_67], %82 {strides = array<i32>} : memref<18x512xf32, #tpu.memory_space<vmem>>, vector<6x32xf32>,
    %84 = vector.extract_strided_slice %7 {offsets = [56, 0], sizes = [6, 32], strides = [1, 1]} : vector<128x32xf32> to vector<6x32xf32>
    %c12_68 = arith.constant 12 : index
    %c384_69 = arith.constant 384 : index
    %85 = vector.load %arg12[%c12_68, %c384_69] : memref<18x512xf32, #tpu.memory_space<vmem>>, vector<6x32xf32>
    tpu.vector_store %arg12[%c12_68, %c384_69], %84 {strides = array<i32>} : memref<18x512xf32, #tpu.memory_space<vmem>>, vector<6x32xf32>,
    %86 = vector.extract_strided_slice %7 {offsets = [88, 0], sizes = [6, 32], strides = [1, 1]} : vector<128x32xf32> to vector<6x32xf32>
    %c0_70 = arith.constant 0 : index
    %c416 = arith.constant 416 : index
    %87 = vector.load %arg12[%c0_70, %c416] : memref<18x512xf32, #tpu.memory_space<vmem>>, vector<6x32xf32>
    tpu.vector_store %arg12[%c0_70, %c416], %86 {strides = array<i32>} : memref<18x512xf32, #tpu.memory_space<vmem>>, vector<6x32xf32>,
    %88 = vector.extract_strided_slice %7 {offsets = [104, 0], sizes = [6, 32], strides = [1, 1]} : vector<128x32xf32> to vector<6x32xf32>
    %c6_71 = arith.constant 6 : index
    %c416_72 = arith.constant 416 : index
    %89 = vector.load %arg12[%c6_71, %c416_72] : memref<18x512xf32, #tpu.memory_space<vmem>>, vector<6x32xf32>
    tpu.vector_store %arg12[%c6_71, %c416_72], %88 {strides = array<i32>} : memref<18x512xf32, #tpu.memory_space<vmem>>, vector<6x32xf32>,
    %90 = vector.extract_strided_slice %7 {offsets = [120, 0], sizes = [6, 32], strides = [1, 1]} : vector<128x32xf32> to vector<6x32xf32>
    %c12_73 = arith.constant 12 : index
    %c416_74 = arith.constant 416 : index
    %91 = vector.load %arg12[%c12_73, %c416_74] : memref<18x512xf32, #tpu.memory_space<vmem>>, vector<6x32xf32>
    tpu.vector_store %arg12[%c12_73, %c416_74], %90 {strides = array<i32>} : memref<18x512xf32, #tpu.memory_space<vmem>>, vector<6x32xf32>,
    %92 = vector.extract_strided_slice %7 {offsets = [26, 0], sizes = [6, 32], strides = [1, 1]} : vector<128x32xf32> to vector<6x32xf32>
    %c0_75 = arith.constant 0 : index
    %c448 = arith.constant 448 : index
    %93 = vector.load %arg12[%c0_75, %c448] : memref<18x512xf32, #tpu.memory_space<vmem>>, vector<6x32xf32>
    tpu.vector_store %arg12[%c0_75, %c448], %92 {strides = array<i32>} : memref<18x512xf32, #tpu.memory_space<vmem>>, vector<6x32xf32>,
    %94 = vector.extract_strided_slice %7 {offsets = [42, 0], sizes = [6, 32], strides = [1, 1]} : vector<128x32xf32> to vector<6x32xf32>
    %c6_76 = arith.constant 6 : index
    %c448_77 = arith.constant 448 : index
    %95 = vector.load %arg12[%c6_76, %c448_77] : memref<18x512xf32, #tpu.memory_space<vmem>>, vector<6x32xf32>
    tpu.vector_store %arg12[%c6_76, %c448_77], %94 {strides = array<i32>} : memref<18x512xf32, #tpu.memory_space<vmem>>, vector<6x32xf32>,
    %96 = vector.extract_strided_slice %7 {offsets = [58, 0], sizes = [6, 32], strides = [1, 1]} : vector<128x32xf32> to vector<6x32xf32>
    %c12_78 = arith.constant 12 : index
    %c448_79 = arith.constant 448 : index
    %97 = vector.load %arg12[%c12_78, %c448_79] : memref<18x512xf32, #tpu.memory_space<vmem>>, vector<6x32xf32>
    tpu.vector_store %arg12[%c12_78, %c448_79], %96 {strides = array<i32>} : memref<18x512xf32, #tpu.memory_space<vmem>>, vector<6x32xf32>,
    %98 = vector.extract_strided_slice %7 {offsets = [90, 0], sizes = [6, 32], strides = [1, 1]} : vector<128x32xf32> to vector<6x32xf32>
    %c0_80 = arith.constant 0 : index
    %c480 = arith.constant 480 : index
    %99 = vector.load %arg12[%c0_80, %c480] : memref<18x512xf32, #tpu.memory_space<vmem>>, vector<6x32xf32>
    tpu.vector_store %arg12[%c0_80, %c480], %98 {strides = array<i32>} : memref<18x512xf32, #tpu.memory_space<vmem>>, vector<6x32xf32>,
    %100 = vector.extract_strided_slice %7 {offsets = [106, 0], sizes = [6, 32], strides = [1, 1]} : vector<128x32xf32> to vector<6x32xf32>
    %c6_81 = arith.constant 6 : index
    %c480_82 = arith.constant 480 : index
    %101 = vector.load %arg12[%c6_81, %c480_82] : memref<18x512xf32, #tpu.memory_space<vmem>>, vector<6x32xf32>
    tpu.vector_store %arg12[%c6_81, %c480_82], %100 {strides = array<i32>} : memref<18x512xf32, #tpu.memory_space<vmem>>, vector<6x32xf32>,
    %102 = vector.extract_strided_slice %7 {offsets = [122, 0], sizes = [6, 32], strides = [1, 1]} : vector<128x32xf32> to vector<6x32xf32>
    %c12_83 = arith.constant 12 : index
    %c480_84 = arith.constant 480 : index
    %103 = vector.load %arg12[%c12_83, %c480_84] : memref<18x512xf32, #tpu.memory_space<vmem>>, vector<6x32xf32>
    tpu.vector_store %arg12[%c12_83, %c480_84], %102 {strides = array<i32>} : memref<18x512xf32, #tpu.memory_space<vmem>>, vector<6x32xf32>,
    %c0_85 = arith.constant 0 : index
    %c0_86 = arith.constant 0 : index
    %104 = vector.load %arg12[%c0_85, %c0_86] : memref<18x512xf32, #tpu.memory_space<vmem>>, vector<18x512xf32>
    %105 = arith.truncf %104 : vector<18x512xf32> to vector<18x512xbf16>
    %c0_87 = arith.constant 0 : index
    %c0_88 = arith.constant 0 : index
    %106 = vector.load %arg3[%c0_87, %c0_88] : memref<512x64xbf16, #tpu.memory_space<vmem>>, vector<512x64xbf16>
    %cst_89 = arith.constant dense<0.000000e+00> : vector<18x64xf32>
    %107 = tpu.matmul %105, %106, %cst_89 {dimension_numbers = #tpu.dot_dimension_numbers<[1], [0], [0], [1], [0, 0, 1, 1], [], []>} : vector<18x512xbf16>, vector<512x64xbf16>, vector<18x64xf32> -> vector<18x64xf32>
    %c0_90 = arith.constant 0 : index
    %c0_91 = arith.constant 0 : index
    %108 = vector.load %arg4[%c0_90, %c0_91] : memref<1x64xf32, #tpu.memory_space<vmem>>, vector<1x64xf32>
    %109 = vector.broadcast %108 : vector<1x64xf32> to vector<18x64xf32>
    %110 = arith.addf %107, %109 : vector<18x64xf32>
    %cst_92 = arith.constant 0.000000e+00 : f32
    %111 = vector.broadcast %cst_92 : f32 to vector<18x64xf32>
    %112 = arith.maximumf %110, %111 : vector<18x64xf32>
    %113 = vector.extract_strided_slice %112 {offsets = [0, 0], sizes = [2, 64], strides = [1, 1]} : vector<18x64xf32> to vector<2x64xf32>
    %c0_93 = arith.constant 0 : index
    %c0_94 = arith.constant 0 : index
    %114 = vector.load %arg13[%c0_93, %c0_94] : memref<2x576xf32, #tpu.memory_space<vmem>>, vector<2x64xf32>
    tpu.vector_store %arg13[%c0_93, %c0_94], %113 {strides = array<i32>} : memref<2x576xf32, #tpu.memory_space<vmem>>, vector<2x64xf32>,
    %115 = vector.extract_strided_slice %112 {offsets = [2, 0], sizes = [2, 64], strides = [1, 1]} : vector<18x64xf32> to vector<2x64xf32>
    %c0_95 = arith.constant 0 : index
    %c64_96 = arith.constant 64 : index
    %116 = vector.load %arg13[%c0_95, %c64_96] : memref<2x576xf32, #tpu.memory_space<vmem>>, vector<2x64xf32>
    tpu.vector_store %arg13[%c0_95, %c64_96], %115 {strides = array<i32>} : memref<2x576xf32, #tpu.memory_space<vmem>>, vector<2x64xf32>,
    %117 = vector.extract_strided_slice %112 {offsets = [4, 0], sizes = [2, 64], strides = [1, 1]} : vector<18x64xf32> to vector<2x64xf32>
    %c0_97 = arith.constant 0 : index
    %c128_98 = arith.constant 128 : index
    %118 = vector.load %arg13[%c0_97, %c128_98] : memref<2x576xf32, #tpu.memory_space<vmem>>, vector<2x64xf32>
    tpu.vector_store %arg13[%c0_97, %c128_98], %117 {strides = array<i32>} : memref<2x576xf32, #tpu.memory_space<vmem>>, vector<2x64xf32>,
    %119 = vector.extract_strided_slice %112 {offsets = [6, 0], sizes = [2, 64], strides = [1, 1]} : vector<18x64xf32> to vector<2x64xf32>
    %c0_99 = arith.constant 0 : index
    %c192_100 = arith.constant 192 : index
    %120 = vector.load %arg13[%c0_99, %c192_100] : memref<2x576xf32, #tpu.memory_space<vmem>>, vector<2x64xf32>
    tpu.vector_store %arg13[%c0_99, %c192_100], %119 {strides = array<i32>} : memref<2x576xf32, #tpu.memory_space<vmem>>, vector<2x64xf32>,
    %121 = vector.extract_strided_slice %112 {offsets = [8, 0], sizes = [2, 64], strides = [1, 1]} : vector<18x64xf32> to vector<2x64xf32>
    %c0_101 = arith.constant 0 : index
    %c256_102 = arith.constant 256 : index
    %122 = vector.load %arg13[%c0_101, %c256_102] : memref<2x576xf32, #tpu.memory_space<vmem>>, vector<2x64xf32>
    tpu.vector_store %arg13[%c0_101, %c256_102], %121 {strides = array<i32>} : memref<2x576xf32, #tpu.memory_space<vmem>>, vector<2x64xf32>,
    %123 = vector.extract_strided_slice %112 {offsets = [10, 0], sizes = [2, 64], strides = [1, 1]} : vector<18x64xf32> to vector<2x64xf32>
    %c0_103 = arith.constant 0 : index
    %c320_104 = arith.constant 320 : index
    %124 = vector.load %arg13[%c0_103, %c320_104] : memref<2x576xf32, #tpu.memory_space<vmem>>, vector<2x64xf32>
    tpu.vector_store %arg13[%c0_103, %c320_104], %123 {strides = array<i32>} : memref<2x576xf32, #tpu.memory_space<vmem>>, vector<2x64xf32>,
    %125 = vector.extract_strided_slice %112 {offsets = [12, 0], sizes = [2, 64], strides = [1, 1]} : vector<18x64xf32> to vector<2x64xf32>
    %c0_105 = arith.constant 0 : index
    %c384_106 = arith.constant 384 : index
    %126 = vector.load %arg13[%c0_105, %c384_106] : memref<2x576xf32, #tpu.memory_space<vmem>>, vector<2x64xf32>
    tpu.vector_store %arg13[%c0_105, %c384_106], %125 {strides = array<i32>} : memref<2x576xf32, #tpu.memory_space<vmem>>, vector<2x64xf32>,
    %127 = vector.extract_strided_slice %112 {offsets = [14, 0], sizes = [2, 64], strides = [1, 1]} : vector<18x64xf32> to vector<2x64xf32>
    %c0_107 = arith.constant 0 : index
    %c448_108 = arith.constant 448 : index
    %128 = vector.load %arg13[%c0_107, %c448_108] : memref<2x576xf32, #tpu.memory_space<vmem>>, vector<2x64xf32>
    tpu.vector_store %arg13[%c0_107, %c448_108], %127 {strides = array<i32>} : memref<2x576xf32, #tpu.memory_space<vmem>>, vector<2x64xf32>,
    %129 = vector.extract_strided_slice %112 {offsets = [16, 0], sizes = [2, 64], strides = [1, 1]} : vector<18x64xf32> to vector<2x64xf32>
    %c0_109 = arith.constant 0 : index
    %c512 = arith.constant 512 : index
    %130 = vector.load %arg13[%c0_109, %c512] : memref<2x576xf32, #tpu.memory_space<vmem>>, vector<2x64xf32>
    tpu.vector_store %arg13[%c0_109, %c512], %129 {strides = array<i32>} : memref<2x576xf32, #tpu.memory_space<vmem>>, vector<2x64xf32>,
    %c0_110 = arith.constant 0 : index
    %c0_111 = arith.constant 0 : index
    %131 = vector.load %arg13[%c0_110, %c0_111] : memref<2x576xf32, #tpu.memory_space<vmem>>, vector<2x576xf32>
    %132 = arith.truncf %131 : vector<2x576xf32> to vector<2x576xbf16>
    %c0_112 = arith.constant 0 : index
    %c0_113 = arith.constant 0 : index
    %133 = vector.load %arg5[%c0_112, %c0_113] : memref<576x64xbf16, #tpu.memory_space<vmem>>, vector<576x64xbf16>
    %cst_114 = arith.constant dense<0.000000e+00> : vector<2x64xf32>
    %134 = tpu.matmul %132, %133, %cst_114 {dimension_numbers = #tpu.dot_dimension_numbers<[1], [0], [0], [1], [0, 0, 1, 1], [], []>} : vector<2x576xbf16>, vector<576x64xbf16>, vector<2x64xf32> -> vector<2x64xf32>
    %c0_115 = arith.constant 0 : index
    %c0_116 = arith.constant 0 : index
    %135 = vector.load %arg6[%c0_115, %c0_116] : memref<1x64xf32, #tpu.memory_space<vmem>>, vector<1x64xf32>
    %136 = vector.broadcast %135 : vector<1x64xf32> to vector<2x64xf32>
    %137 = arith.addf %134, %136 : vector<2x64xf32>
    %cst_117 = arith.constant 0.000000e+00 : f32
    %138 = vector.broadcast %cst_117 : f32 to vector<2x64xf32>
    %139 = arith.maximumf %137, %138 : vector<2x64xf32>
    %c0_118 = arith.constant 0 : index
    %c0_119 = arith.constant 0 : index
    %140 = vector.load %arg14[%c0_118, %c0_119] : memref<2x64xf32, #tpu.memory_space<vmem>>, vector<2x64xf32>
    tpu.vector_store %arg14[%c0_118, %c0_119], %139 {strides = array<i32>} : memref<2x64xf32, #tpu.memory_space<vmem>>, vector<2x64xf32>,
    %c0_120 = arith.constant 0 : index
    %c0_121 = arith.constant 0 : index
    %141 = vector.load %arg14[%c0_120, %c0_121] : memref<2x64xf32, #tpu.memory_space<vmem>>, vector<2x64xf32>
    %142 = arith.truncf %141 : vector<2x64xf32> to vector<2x64xbf16>
    %c0_122 = arith.constant 0 : index
    %c0_123 = arith.constant 0 : index
    %143 = vector.load %arg7[%c0_122, %c0_123] : memref<64x512xbf16, #tpu.memory_space<vmem>>, vector<64x512xbf16>
    %cst_124 = arith.constant dense<0.000000e+00> : vector<2x512xf32>
    %144 = tpu.matmul %142, %143, %cst_124 {dimension_numbers = #tpu.dot_dimension_numbers<[1], [0], [0], [1], [0, 0, 1, 1], [], []>} : vector<2x64xbf16>, vector<64x512xbf16>, vector<2x512xf32> -> vector<2x512xf32>
    %c0_125 = arith.constant 0 : index
    %c0_126 = arith.constant 0 : index
    %145 = vector.load %arg8[%c0_125, %c0_126] : memref<1x512xf32, #tpu.memory_space<vmem>>, vector<1x512xf32>
    %146 = vector.broadcast %145 : vector<1x512xf32> to vector<2x512xf32>
    %147 = arith.addf %144, %146 : vector<2x512xf32>
    %cst_127 = arith.constant 0.000000e+00 : f32
    %148 = vector.broadcast %cst_127 : f32 to vector<2x512xf32>
    %149 = arith.maximumf %147, %148 : vector<2x512xf32>
    %150 = arith.truncf %149 : vector<2x512xf32> to vector<2x512xbf16>
    %c0_128 = arith.constant 0 : index
    %c0_129 = arith.constant 0 : index
    %151 = vector.load %arg9[%c0_128, %c0_129] : memref<512x128xbf16, #tpu.memory_space<vmem>>, vector<512x128xbf16>
    %cst_130 = arith.constant dense<0.000000e+00> : vector<2x128xf32>
    %152 = tpu.matmul %150, %151, %cst_130 {dimension_numbers = #tpu.dot_dimension_numbers<[1], [0], [0], [1], [0, 0, 1, 1], [], []>} : vector<2x512xbf16>, vector<512x128xbf16>, vector<2x128xf32> -> vector<2x128xf32>
    %c0_131 = arith.constant 0 : index
    %c0_132 = arith.constant 0 : index
    %153 = vector.load %arg10[%c0_131, %c0_132] : memref<1x128xf32, #tpu.memory_space<vmem>>, vector<1x128xf32>
    %154 = vector.broadcast %153 : vector<1x128xf32> to vector<2x128xf32>
    %155 = arith.addf %152, %154 : vector<2x128xf32>
    %c0_133 = arith.constant 0 : index
    %c0_134 = arith.constant 0 : index
    %156 = vector.load %arg11[%c0_133, %c0_134] : memref<2x128xf32, #tpu.memory_space<vmem>>, vector<2x128xf32>
    tpu.vector_store %arg11[%c0_133, %c0_134], %155 {strides = array<i32>} : memref<2x128xf32, #tpu.memory_space<vmem>>, vector<2x128xf32>,
    return
  }
}

</mosaic_0001>

<bundles_post_ra>
// kernel: qnetwork_cnn_forward.1
= control target key start
LH: loop header
LB: loop body
LE: loop exit
PB: predicated region body
PF: predicated region fallthrough
CT: control target
= control target key end

     0   :  { %s3433_s0 = inlined_call_operand.vmem [shape: bf16[128,256], index: 0, kind: input, shape index: {}]   ;;  %s3434_s1 = inlined_call_operand.vmem [shape: bf16[256,32], index: 1, kind: input, shape index: {}]   ;;  %s3435_s2 = inlined_call_operand.vmem [shape: f32[1,32], index: 2, kind: input, shape index: {}]   ;;  %s3436_s3 = inlined_call_operand.vmem [shape: bf16[512,64], index: 3, kind: input, shape index: {}]   ;;  %s3437_s4 = inlined_call_operand.vmem [shape: f32[1,64], index: 4, kind: input, shape index: {}]   ;;  %s3438_s5 = inlined_call_operand.vmem [shape: bf16[576,64], index: 5, kind: input, shape index: {}]   ;;  %s3439_s6 = inlined_call_operand.vmem [shape: f32[1,64], index: 6, kind: input, shape index: {}]   ;;  %s3440_s7 = inlined_call_operand.vmem [shape: bf16[64,512], index: 7, kind: input, shape index: {}]   ;;  %s3441_s8 = inlined_call_operand.vmem [shape: f32[1,512], index: 8, kind: input, shape index: {}]   ;;  %s3442_s9 = inlined_call_operand.vmem [shape: bf16[512,128], index: 9, kind: input, shape index: {}]   ;;  %s3443_s10 = inlined_call_operand.vmem [shape: f32[1,128], index: 10, kind: input, shape index: {}]   ;;  %s3444_s11 = inlined_call_operand.hbm [shape: f32[2,128], index: 11, kind: output, shape index: {}]  }
   0x1   :  { %v2510_v0 = vld [vmem:[%s3434_s1 + $0x78] sm:$0xff]   ;;  %v2512_v2 = vld [vmem:[%s3434_s1 + $0x70] sm:$0xff]   ;;  %v2514_v4 = vld [vmem:[%s3434_s1 + $0x68] sm:$0xff]  }
   0x2   :  { %v2511_v1 = vld [vmem:[%s3434_s1 + $0x38] sm:$0xff]   ;;  %2277 = vmatprep.subr.bf16.mxu0 %v2510_v0  ;;  %v2513_v3 = vld [vmem:[%s3434_s1 + $0x30] sm:$0xff]   ;;  %v2515_v5 = vld [vmem:[%s3434_s1 + $0x28] sm:$0xff]  }
   0x3   :  { %2278 = vmatpush3.bf16.msra.mxu0 %v2511_v1  ;;  %v2516_v6 = vld [vmem:[%s3434_s1 + $0x60] sm:$0xff]   ;;  %v2518_v8 = vld [vmem:[%s3434_s1 + $0x58] sm:$0xff]   ;;  %v2520_v10 = vld [vmem:[%s3434_s1 + $0x50] sm:$0xff]  }
   0x4   :  { %2279 = vmatprep.subr.bf16.mxu0 %v2512_v2  ;;  %v2517_v7 = vld [vmem:[%s3434_s1 + $0x20] sm:$0xff]   ;;  %v2519_v9 = vld [vmem:[%s3434_s1 + $0x18] sm:$0xff]   ;;  %v2521_v12 = vld [vmem:[%s3434_s1 + $0x10] sm:$0xff]  }
   0x5   :  { %v2528_v11 = vld [vmem:[%s3433_s0 + $0x4] ss:$8 sps:$4 sm:$0xff]   ;;  %v2526_v17 = vld [vmem:[%s3433_s0] ss:$8 sps:$4 sm:$0xff]   ;;  %v2529_v18 = vld [vmem:[%s3433_s0 + $0x14] ss:$8 sps:$4 sm:$0xff]  }
   0x6   :  { %303 = vmatprep.mubr.bf16.mxu0 %v2528_v11  ;;  %v2522_v13 = vld [vmem:[%s3434_s1 + $0x48] sm:$0xff]   ;;  %v2524_v15 = vld [vmem:[%s3434_s1 + $0x40] sm:$0xff]   ;;  %v2531_v19 = vld [vmem:[%s3433_s0 + $0x10] ss:$8 sps:$4 sm:$0xff]  }
   0x7   :  { %2280 = vmatpush3.bf16.msra.mxu0 %v2513_v3  ;;  %v2523_v14 = vld [vmem:[%s3434_s1 + $0x8] sm:$0xff]   ;;  %v2525_v16 = vld [vmem:[%s3434_s1] sm:$0xff]   ;;  %v2535_v22 = vld [vmem:[%s3433_s0 + $0x34] ss:$8 sps:$4 sm:$0xff]  }
   0x8   :  { %2281 = vmatprep.subr.bf16.mxu0 %v2514_v4  ;;  %v2532_v20 = vld [vmem:[%s3433_s0 + $0x24] ss:$8 sps:$4 sm:$0xff]   ;;  %v2534_v21 = vld [vmem:[%s3433_s0 + $0x20] ss:$8 sps:$4 sm:$0xff]   ;;  %v2537_v23 = vld [vmem:[%s3433_s0 + $0x30] ss:$8 sps:$4 sm:$0xff]  }
   0x9   :  { %v2538_v24 = vld [vmem:[%s3433_s0 + $0x44] ss:$8 sps:$4 sm:$0xff]   ;;  %v2540_v25 = vld [vmem:[%s3433_s0 + $0x40] ss:$8 sps:$4 sm:$0xff]   ;;  %v2541_v26 = vld [vmem:[%s3433_s0 + $0x54] ss:$8 sps:$4 sm:$0xff]  }
   0xa   :  { %v2543_v27 = vld [vmem:[%s3433_s0 + $0x50] ss:$8 sps:$4 sm:$0xff]   ;;  %v2544_v28 = vld [vmem:[%s3433_s0 + $0x64] ss:$8 sps:$4 sm:$0xff]   ;;  %v2546_v29 = vld [vmem:[%s3433_s0 + $0x60] ss:$8 sps:$4 sm:$0xff]  }
   0xb   :  { %2282 = vmatpush3.bf16.msra.mxu0 %v2515_v5  ;;  %v2547_v30 = vld [vmem:[%s3433_s0 + $0x74] ss:$8 sps:$4 sm:$0xff]   ;;  %v2549_v31 = vld [vmem:[%s3433_s0 + $0x70] ss:$8 sps:$4 sm:$0xff]  }
   0xc   :  { %2283 = vmatprep.subr.bf16.mxu0 %v2516_v6 }
   0xf   :  { %2284 = vmatpush3.bf16.msra.mxu0 %v2517_v7 }
  0x10   :  { %2285 = vmatprep.subr.bf16.mxu0 %v2518_v8 }
  0x13   :  { %2286 = vmatpush3.bf16.msra.mxu0 %v2519_v9 }
  0x14   :  { %2287 = vmatprep.subr.bf16.mxu0 %v2520_v10 }
  0x17   :  { %2288 = vmatpush3.bf16.msra.mxu0 %v2521_v12 }
  0x18   :  { %2289 = vmatprep.subr.bf16.mxu0 %v2522_v13 }
  0x1b   :  { %2290 = vmatpush3.bf16.msra.mxu0 %v2523_v14 }
  0x1c   :  { %2291 = vmatprep.subr.bf16.mxu0 %v2524_v15 }
  0x1f   :  { %2292 = vmatpush3.bf16.msra.mxu0 %v2525_v16 }
  0x22   :  { %304 = vmatmul.mubr.bf16.vlgmr.msra.gmra.mxu0 %v2526_v17 }
  0x23   :  { %311 = vmatprep.mubr.bf16.mxu0 %v2529_v18 }
  0x2a   :  { %312 = vmatmul.mubr.bf16.gmra.mxu0 %v2531_v19 }
  0x2b   :  { %319 = vmatprep.mubr.bf16.mxu0 %v2532_v20 }
  0x32   :  { %320 = vmatmul.mubr.bf16.gmra.mxu0 %v2534_v21 }
  0x33   :  { %327 = vmatprep.mubr.bf16.mxu0 %v2535_v22 }
  0x3a   :  { %328 = vmatmul.mubr.bf16.gmra.mxu0 %v2537_v23 }
  0x3b   :  { %335 = vmatprep.mubr.bf16.mxu0 %v2538_v24 }
  0x42   :  { %336 = vmatmul.mubr.bf16.gmra.mxu0 %v2540_v25 }
  0x43   :  { %343 = vmatprep.mubr.bf16.mxu0 %v2541_v26 }
  0x4a   :  { %344 = vmatmul.mubr.bf16.gmra.mxu0 %v2543_v27 }
  0x4b   :  { %351 = vmatprep.mubr.bf16.mxu0 %v2544_v28 }
  0x52   :  { %352 = vmatmul.mubr.bf16.gmra.mxu0 %v2546_v29 }
  0x53   :  { %359 = vmatprep.mubr.bf16.mxu0 %v2547_v30 }
  0x5a   :  { %360 = vmatmul.mubr.bf16.gmra.mxu0 %v2549_v31 }
  0x5b   :  { %16 = vsyncpa [#allocation6], 0  ;;  %v2864_v33 = vld [vmem:[%s3435_s2] ss:$0 sm:$0xff]  ;;  %vm384_vm0 = vcmask 259072   ;;  %s2697_s0 = smov 64  }
  0x5c   :  { %vm389_vm1 = vcmask 261126   ;;  %vm391_vm2 = vcmask 257024   ;;  %vm396_vm3 = vcmask 261124   ;;  %vm398_vm4 = vcmask 254976   ;;  %v2550_v22 = vld [vmem:[%s3436_s3 + $0x78] sm:$0xff]   ;;  %v2552_v28 = vld [vmem:[%s3436_s3 + $0x70] sm:$0xff]  }
  0x5d   :  { %v2551_v24 = vld [vmem:[%s3436_s3 + $0x38] sm:$0xff]   ;;  %2341 = vmatprep.subr.bf16.mxu1 %v2550_v22  ;;  %s2698_s12 = smov 32   ;;  %s2699_s17 = smov 96   ;;  %vm404_vm5 = vcmask 521472   ;;  %vm429_vm6 = vcmask 783872   ;;  %vm451_vm7 = vcmask 1046272  }
  0x5e   :  { %2342 = vmatpush3.bf16.msra.mxu1 %v2551_v24  ;;  %vm411_vm8 = vcmask 523526   ;;  %vm413_vm9 = vcmask 519424   ;;  %vm435_vm10 = vcmask 785926   ;;  %vm437_vm11 = vcmask 781824   ;;  %s2704_s25 = smov [#allocation5]  }
  0x5f   :  { %2343 = vmatprep.subr.bf16.mxu1 %v2552_v28  ;;  %vm457_vm12 = vcmask 1048326   ;;  %vm459_vm13 = vcmask 1044224   ;;  %vm420_vm14 = vcmask 523524   ;;  %vm422_vm15 = vcmask 517376   ;;  %s2113_s26 = sshll.u32 %s2704_s25, 4  ;;  %s2114_s26 = int_to_ptr.vmem [resolvable:$true] %s2113_s26 }
  0x60   :  { %s2675_s27 = scalar_lea.vmem %s2114_s26, 32  ;;  %p2680_p1 = scmp.lt.s32.totalorder %s2114_s26, %s2114_s26 }
  0x61   :  { %p2676_p0 = scmp.ne.s32.totalorder %s2114_s26, %s2675_s27  ;;  %p2681_p2 = scmp.lt.s32.totalorder %s2675_s27, %s2675_s27 }
  0x63   :  { %p2682_p3 = por %p2681_p2, %p2680_p1 }
  0x65   :  { %p2683_p4 = pnand %p2682_p3, %p2676_p0 }
  0xe2   :  { %v2293_v32 = vpop.f32.mrf.mxu0 }
  0xe4   :  { %v2294_v34 = vpop.f32.mrf.mxu0 }
  0xe5   :  { %v2295_v35 = vadd.f32 %v2294_v34, %v2293_v32  ;;  %v2553_v32 = vld [vmem:[%s3436_s3 + $0x30] sm:$0xff]  }
  0xe6   :  { %v2296_v36 = vpop.f32.mrf.mxu0  ;;  %2344 = vmatpush3.bf16.msra.mxu1 %v2553_v32 }
  0xe7   :  { %v306_v37 = vadd.f32 %v2295_v35, %v2864_v33 }
  0xe8   :  { %v2297_v38 = vpop.f32.mrf.mxu0 }
  0xe9   :  { %v368_v39 = vmax.f32 %v306_v37, 0.0  ;;  %v2298_v40 = vadd.f32 %v2297_v38, %v2296_v36  ;;  %v2554_v38 = vld [vmem:[%s3436_s3 + $0x68] sm:$0xff]  }
  0xea   :  { %v2299_v41 = vpop.f32.mrf.mxu0  ;;  %2345 = vmatprep.subr.bf16.mxu1 %v2554_v38 }
  0xeb   :  { %v309_v42 = vadd.f32 %v2298_v40, %v2864_v33  ;;  %v425_v43 = vrot.slane %v368_v39, 2  ;;  %385 = vst.msk [vmem:[#allocation2] sm:$0x3f] %vm384_vm0, %v368_v39  ;;  %v2555_v40 = vld [vmem:[%s3436_s3 + $0x28] sm:$0xff]  }
  0xec   :  { %v2300_v44 = vpop.f32.mrf.mxu0  ;;  %2346 = vmatpush3.bf16.msra.mxu1 %v2555_v40 }
  0xed   :  { %v369_v45 = vmax.f32 %v309_v42, 0.0  ;;  %v2301_v46 = vadd.f32 %v2300_v44, %v2299_v41  ;;  %426 = vrot.lane.b32.xlu1 %v425_v43, %s2697_s0 }
  0xee   :  { %v2302_v47 = vpop.f32.mrf.mxu0 }
  0xef   :  { %v314_v48 = vadd.f32 %v2301_v46, %v2864_v33  ;;  %v500_v49 = vrot.slane %v369_v45, 2  ;;  %469 = vst.msk [vmem:[#allocation2 + $0x8] sm:$0x3f] %vm384_vm0, %v369_v45  ;;  %v2556_v46 = vld [vmem:[%s3436_s3 + $0x60] sm:$0xff]  }
  0xf0   :  { %v2303_v50 = vpop.f32.mrf.mxu0  ;;  %2347 = vmatprep.subr.bf16.mxu1 %v2556_v46 }
  0xf1   :  { %v370_v51 = vmax.f32 %v314_v48, 0.0  ;;  %v2304_v52 = vadd.f32 %v2303_v50, %v2302_v47  ;;  %501 = vrot.lane.b32.xlu0 %v500_v49, %s2697_s0  ;;  %v2557_v48 = vld [vmem:[%s3436_s3 + $0x20] sm:$0xff]  }
  0xf2   :  { %v2305_v53 = vpop.f32.mrf.mxu0  ;;  %2348 = vmatpush3.bf16.msra.mxu1 %v2557_v48 }
  0xf3   :  { %v317_v54 = vadd.f32 %v2304_v52, %v2864_v33  ;;  %v431_v55 = vrot.slane %v370_v51, 4  ;;  %v2874_v56 = vrot.slane %v370_v51, 2  ;;  %534 = vst.msk [vmem:[#allocation2 + $0x10] sm:$0x3f] %vm384_vm0, %v370_v51 }
  0xf4   :  { %v2306_v57 = vpop.f32.mrf.mxu0 }
  0xf5   :  { %v371_v58 = vmax.f32 %v317_v54, 0.0  ;;  %v2307_v59 = vadd.f32 %v2306_v57, %v2305_v53  ;;  %432 = vrot.lane.b32.xlu0 %v431_v55, %s2697_s0  ;;  %390 = vst.msk [vmem:[#allocation2] sm:$0xc0] %vm389_vm1, %v2874_v56  ;;  %v2558_v54 = vld [vmem:[%s3436_s3 + $0x58] sm:$0xff]  }
  0xf6   :  { %392 = vst.msk [vmem:[#allocation2 + $0x20] sm:$0xf] %vm391_vm2, %v2874_v56  ;;  %v2308_v60 = vpop.f32.mrf.mxu0  ;;  %v2559_v57 = vld [vmem:[%s3436_s3 + $0x18] sm:$0xff]   ;;  %2349 = vmatprep.subr.bf16.mxu1 %v2558_v54 }
  0xf7   :  { %v322_v61 = vadd.f32 %v2307_v59, %v2864_v33  ;;  %v505_v62 = vrot.slane %v371_v58, 4  ;;  %v2883_v63 = vrot.slane %v371_v58, 2  ;;  %591 = vst.msk [vmem:[#allocation2 + $0x18] sm:$0x3f] %vm384_vm0, %v371_v58  ;;  %2350 = vmatpush3.bf16.msra.mxu1 %v2559_v57  ;;  %vm443_vm0 = vcmask 785924  }
  0xf8   :  { %v2309_v0 = vpop.f32.mrf.mxu0 }
  0xf9   :  { %v372_v1 = vmax.f32 %v322_v61, 0.0  ;;  %v2310_v2 = vadd.f32 %v2309_v0, %v2308_v60  ;;  %506 = vrot.lane.b32.xlu1 %v505_v62, %s2697_s0  ;;  %473 = vst.msk [vmem:[#allocation2 + $0x8] sm:$0xc0] %vm389_vm1, %v2883_v63 }
  0xfa   :  { %474 = vst.msk [vmem:[#allocation2 + $0x28] sm:$0xf] %vm391_vm2, %v2883_v63  ;;  %v2311_v3 = vpop.f32.mrf.mxu0 }
  0xfb   :  { %v325_v4 = vadd.f32 %v2310_v2, %v2864_v33  ;;  %v439_v5 = vrot.slane %v372_v1, 6  ;;  %v2892_v6 = vrot.slane %v372_v1, 4  ;;  %v535_v7 = vrot.slane %v372_v1, 2  ;;  %v2560_v1 = vld [vmem:[%s3436_s3 + $0x50] sm:$0xff]  }
  0xfc   :  { %v2312_v8 = vpop.f32.mrf.mxu0  ;;  %2351 = vmatprep.subr.bf16.mxu1 %v2560_v1 }
  0xfd   :  { %v373_v9 = vmax.f32 %v325_v4, 0.0  ;;  %v2313_v10 = vadd.f32 %v2312_v8, %v2311_v3  ;;  %440 = vrot.lane.b32.xlu1 %v439_v5, %s2697_s0  ;;  %397 = vst.msk [vmem:[#allocation2 + $0x20] sm:$0xf0] %vm396_vm3, %v2892_v6  ;;  %v2561_v3 = vld [vmem:[%s3436_s3 + $0x10] sm:$0xff]  }
  0xfe   :  { %399 = vst.msk [vmem:[#allocation2 + $0x40] sm:$0x3] %vm398_vm4, %v2892_v6  ;;  %v2314_v11 = vpop.f32.mrf.mxu0  ;;  %2352 = vmatpush3.bf16.msra.mxu1 %v2561_v3 }
  0xff   :  { %537 = vst.msk [vmem:[#allocation2 + $0x10] sm:$0xc0] %vm389_vm1, %v535_v7  ;;  %v2902_v12 = vadd.f32 %v2313_v10, %v2864_v33  ;;  %v511_v13 = vrot.slane %v373_v9, 6  ;;  %v2904_v14 = vrot.slane %v373_v9, 4  ;;  %v592_v15 = vrot.slane %v373_v9, 2  ;;  %v2562_v10 = vld [vmem:[%s3436_s3 + $0x48] sm:$0xff]  }
 0x100   :  { %538 = vst.msk [vmem:[#allocation2 + $0x30] sm:$0xf] %vm391_vm2, %v535_v7  ;;  %v2315_v16 = vpop.f32.mrf.mxu0  ;;  %2353 = vmatprep.subr.bf16.mxu1 %v2562_v10 }
 0x101   :  { %v374_v17 = vmax.f32 %v2902_v12, 0.0  ;;  %v2316_v18 = vadd.f32 %v2315_v16, %v2314_v11  ;;  %512 = vrot.lane.b32.xlu0 %v511_v13, %s2697_s0  ;;  %478 = vst.msk [vmem:[#allocation2 + $0x28] sm:$0xf0] %vm396_vm3, %v2904_v14  ;;  %v2563_v11 = vld [vmem:[%s3436_s3 + $0x8] sm:$0xff]   ;;  %v2564_v16 = vld [vmem:[%s3436_s3 + $0x40] sm:$0xff]  }
 0x102   :  { %479 = vst.msk [vmem:[#allocation2 + $0x48] sm:$0x3] %vm398_vm4, %v2904_v14  ;;  %v2317_v19 = vpop.f32.mrf.mxu0  ;;  %2354 = vmatpush3.bf16.msra.mxu1 %v2563_v11  ;;  %v2570_v11 = vld [vmem:[%s3436_s3 + $0xe8] sm:$0xff]  }
 0x103   :  { %594 = vst.msk [vmem:[#allocation2 + $0x18] sm:$0xc0] %vm389_vm1, %v592_v15  ;;  %v540_v20 = vrot.slane %v374_v17, 4  ;;  %v2917_v21 = vadd.f32 %v2316_v18, %v2864_v33  ;;  %v2565_v18 = vld [vmem:[%s3436_s3] sm:$0xff]   ;;  %2355 = vmatprep.subr.bf16.mxu1 %v2564_v16  ;;  %v570_v32 = vrot.slane %v374_v17, 6  ;;  %vm445_vm1 = vcmask 779776  }
 0x104   :  { %595 = vst.msk [vmem:[#allocation2 + $0x38] sm:$0xf] %vm391_vm2, %v592_v15  ;;  %v2318_v23 = vpop.f32.mrf.mxu0  ;;  %vm465_vm2 = vcmask 1048324   ;;  %v2571_v16 = vld [vmem:[%s3436_s3 + $0xa8] sm:$0xff]  }
 0x105   :  { %v375_v25 = vmax.f32 %v2917_v21, 0.0  ;;  %v2319_v26 = vadd.f32 %v2318_v23, %v2317_v19  ;;  %542 = vst.msk [vmem:[#allocation2 + $0x30] sm:$0xf0] %vm396_vm3, %v540_v20  ;;  %v2566_v23 = vld [vmem:[%s3436_s3 + $0xf8] sm:$0xff]  }
 0x106   :  { %543 = vst.msk [vmem:[#allocation2 + $0x50] sm:$0x3] %vm398_vm4, %v540_v20  ;;  %v2320_v27 = vpop.f32.mrf.mxu0  ;;  %2356 = vmatpush3.bf16.msra.mxu1 %v2565_v18 }
 0x107   :  { %v597_v29 = vrot.slane %v375_v25, 4  ;;  %v338_v30 = vadd.f32 %v2319_v26, %v2864_v33  ;;  %2369 = vmatprep.subr.bf16.mxu1 %v2566_v23  ;;  %v2573_v23 = vld [vmem:[%s3436_s3 + $0xa0] sm:$0xff]  }
 0x108   :  { %v2321_v31 = vpop.f32.mrf.mxu0 }
 0x109   :  { %v376_v34 = vmax.f32 %v338_v30, 0.0  ;;  %v2322_v35 = vadd.f32 %v2321_v31, %v2320_v27  ;;  %599 = vst.msk [vmem:[#allocation2 + $0x38] sm:$0xf0] %vm396_vm3, %v597_v29  ;;  %v627_v31 = vrot.slane %v375_v25, 6  ;;  %vm467_vm3 = vcmask 1042176  }
 0x10a   :  { %600 = vst.msk [vmem:[#allocation2 + $0x58] sm:$0x3] %vm398_vm4, %v597_v29  ;;  %v2323_v36 = vpop.f32.mrf.mxu0  ;;  %vm1030_vm4 = vcmask 517120  }
 0x10b   :  { %v341_v37 = vadd.f32 %v2322_v35, %v2864_v33  ;;  %401 = vrot.lane.b32.xlu1 %v376_v34, %s2698_s12  ;;  %v447_v43 = vrot.slane %v376_v34, 2 }
 0x10c   :  { %v2324_v39 = vpop.f32.mrf.mxu0 }
 0x10d   :  { %v377_v41 = vmax.f32 %v341_v37, 0.0  ;;  %v2325_v42 = vadd.f32 %v2324_v39, %v2323_v36 }
 0x10e   :  { %v2326_v44 = vpop.f32.mrf.mxu0 }
 0x10f   :  { %v346_v45 = vadd.f32 %v2325_v42, %v2864_v33  ;;  %481 = vrot.lane.b32.xlu0 %v377_v41, %s2698_s12  ;;  %448 = vrot.lane.b32.xlu1 %v447_v43, %s2699_s17  ;;  %v517_v51 = vrot.slane %v377_v41, 2 }
 0x110   :  { %v2327_v47 = vpop.f32.mrf.mxu0 }
 0x111   :  { %v2956_v49 = vmax.f32 %v346_v45, 0.0  ;;  %v2328_v50 = vadd.f32 %v2327_v47, %v2326_v44 }
 0x112   :  { %v2329_v52 = vpop.f32.mrf.mxu0 }
 0x113   :  { %v349_v53 = vadd.f32 %v2328_v50, %v2864_v33  ;;  %518 = vrot.lane.b32.xlu0 %v517_v51, %s2699_s17  ;;  %v407_v60 = vrot.slane %v2956_v49, 2  ;;  %v453_v7 = vrot.slane %v2956_v49, 4 }
 0x114   :  { %v2330_v55 = vpop.f32.mrf.mxu0 }
 0x115   :  { %v2966_v58 = vmax.f32 %v349_v53, 0.0  ;;  %v2331_v59 = vadd.f32 %v2330_v55, %v2329_v52 }
 0x116   :  { %v2332_v61 = vpop.f32.mrf.mxu0 }
 0x117   :  { %v354_v62 = vadd.f32 %v2331_v59, %v2864_v33  ;;  %408 = vrot.lane.b32.xlu0 %v407_v60, %s2698_s12  ;;  %v522_v0 = vrot.slane %v2966_v58, 4  ;;  %v486_v19 = vrot.slane %v2966_v58, 2 }
 0x118   :  { %v2333_v2 = vpop.f32.mrf.mxu0 }
 0x119   :  { %v380_v4 = vmax.f32 %v354_v62, 0.0  ;;  %v2334_v5 = vadd.f32 %v2333_v2, %v2332_v61  ;;  %523 = vrot.lane.b32.xlu1 %v522_v0, %s2699_s17  ;;  %v2567_v2 = vld [vmem:[%s3436_s3 + $0xb8] sm:$0xff]  }
 0x11a   :  { %v2335_v20 = vpop.f32.mrf.mxu0 }
 0x11b   :  { %v357_v8 = vadd.f32 %v2334_v5, %v2864_v33  ;;  %454 = vrot.lane.b32.xlu0 %v453_v7, %s2699_s17  ;;  %v416_v9 = vrot.slane %v380_v4, 4  ;;  %v461_v15 = vrot.slane %v380_v4, 6  ;;  %v548_v27 = vrot.slane %v380_v4, 2  ;;  %v2568_v5 = vld [vmem:[%s3436_s3 + $0xf0] sm:$0xff]  }
 0x11c   :  { %v2336_v26 = vpop.f32.mrf.mxu0 }
 0x11d   :  { %417 = vrot.lane.b32.xlu1 %v416_v9, %s2698_s12  ;;  %v381_v13 = vmax.f32 %v357_v8, 0.0 }
 0x11e   :  { %v2338_v28 = vpop.f32.mrf.mxu0 }
 0x11f   :  { %601 = vrot.lane.b32.xlu0 %v2966_v58, %s2698_s12  ;;  %v493_v22 = vrot.slane %v381_v13, 4  ;;  %v528_v24 = vrot.slane %v381_v13, 6  ;;  %v605_v21 = vrot.slane %v381_v13, 2 }
 0x120   :  { %v2339_v29 = vpop.f32.mrf.mxu0 }
 0x121   :  { %462 = vrot.lane.b32.xlu1 %v461_v15, %s2699_s17  ;;  %v2340_v30 = vadd.f32 %v2339_v29, %v2338_v28  ;;  %v2575_v28 = vld [vmem:[%s3436_s3 + $0x98] sm:$0xff]  }
 0x123   :  { %487 = vrot.lane.b32.xlu0 %v486_v19, %s2698_s12  ;;  %v365_v34 = vadd.f32 %v2340_v30, %v2864_v33  ;;  %v2576_v30 = vld [vmem:[%s3436_s3 + $0xd0] sm:$0xff]  }
 0x125   :  { %494 = vrot.lane.b32.xlu1 %v493_v22, %s2698_s12 }
 0x127   :  { %529 = vrot.lane.b32.xlu0 %v528_v24, %s2699_s17 }
 0x129   :  { %544 = vrot.lane.b32.xlu1 %v2956_v49, %s2698_s12 }
 0x12b   :  { %549 = vrot.lane.b32.xlu0 %v548_v27, %s2698_s12 }
 0x12d   :  { %622 = vrot.lane.b32.xlu1 %v2904_v14, %s2697_s0  ;;  %v2337_v14 = vadd.f32 %v2336_v26, %v2335_v20  ;;  %v2572_v20 = vld [vmem:[%s3436_s3 + $0xe0] sm:$0xff]   ;;  %v2574_v26 = vld [vmem:[%s3436_s3 + $0xd8] sm:$0xff]  }
 0x12f   :  { %618 = vrot.lane.b32.xlu0 %v2883_v63, %s2697_s0  ;;  %v383_v63 = vmax.f32 %v365_v34, 0.0 }
 0x131   :  { %561 = vrot.lane.b32.xlu1 %v2874_v56, %s2697_s0  ;;  %v362_v56 = vadd.f32 %v2337_v14, %v2864_v33  ;;  %v612_v12 = vrot.slane %v383_v63, 4  ;;  %v642_v25 = vrot.slane %v383_v63, 6  ;;  %v2578_v14 = vld [vmem:[%s3436_s3 + $0xc8] sm:$0xff]  }
 0x133   :  { %628 = vrot.lane.b32.xlu0 %v627_v31, %s2697_s0  ;;  %v382_v17 = vmax.f32 %v362_v56, 0.0  ;;  %v2579_v56 = vld [vmem:[%s3436_s3 + $0x88] sm:$0xff]  }
 0x135   :  { %571 = vrot.lane.b32.xlu1 %v570_v32, %s2697_s0  ;;  %v585_v33 = vrot.slane %v382_v17, 6  ;;  %v2577_v32 = vld [vmem:[%s3436_s3 + $0x90] sm:$0xff]  }
 0x137   :  { %565 = vrot.lane.b32.xlu0 %v2892_v6, %s2697_s0  ;;  %v555_v6 = vrot.slane %v382_v17, 4 }
 0x139   :  { %576 = vrot.lane.b32.xlu1 %v407_v60, %s2699_s17 }
 0x13b   :  { %633 = vrot.lane.b32.xlu0 %v486_v19, %s2699_s17 }
 0x13d   :  { %606 = vrot.lane.b32.xlu1 %v605_v21, %s2698_s12 }
 0x13f   :  { %613 = vrot.lane.b32.xlu0 %v612_v12, %s2698_s12  ;;  %v2580_v12 = vld [vmem:[%s3436_s3 + $0xc0] sm:$0xff]  }
 0x141   :  { %637 = vrot.lane.b32.xlu1 %v493_v22, %s2699_s17 }
 0x143   :  { %643 = vrot.lane.b32.xlu0 %v642_v25, %s2699_s17 }
 0x145   :  { %556 = vrot.lane.b32.xlu1 %v555_v6, %s2698_s12 }
 0x147   :  { %580 = vrot.lane.b32.xlu0 %v416_v9, %s2699_s17  ;;  %v2569_v9 = vld [vmem:[%s3436_s3 + $0xb0] sm:$0xff]  }
 0x149   :  { %586 = vrot.lane.b32.xlu1 %v585_v33, %s2699_s17  ;;  %v2581_v33 = vld [vmem:[%s3436_s3 + $0x80] sm:$0xff]  }
 0x15f   :  { %v427_v35 = vpop.permute.xlu1 %426 }
 0x163   :  { %v502_v36 = vpop.permute.xlu0 %501 }
 0x167   :  { %v433_v38 = vpop.permute.xlu0 %432 }
 0x16b   :  { %v507_v37 = vpop.permute.xlu1 %506 }
 0x16f   :  { %v441_v39 = vpop.permute.xlu1 %440 }
 0x173   :  { %v513_v40 = vpop.permute.xlu0 %512 }
 0x17d   :  { %v402_v41 = vpop.permute.xlu1 %401 }
 0x17e   :  { %405 = vst.msk [vmem:[#allocation2] sm:$0x3f] %vm404_vm5, %v402_v41 }
 0x17f   :  { %430 = vst.msk [vmem:[#allocation2] sm:$0x3f] %vm429_vm6, %v427_v35 }
 0x181   :  { %v482_v42 = vpop.permute.xlu0 %481  ;;  %v449_v43 = vpop.permute.xlu1 %448 }
 0x182   :  { %484 = vst.msk [vmem:[#allocation2 + $0x8] sm:$0x3f] %vm404_vm5, %v482_v42  ;;  %v2582_v42 = vld [vmem:[%s3438_s5 + $0x78] sm:$0xff]  }
 0x183   :  { %452 = vst.msk [vmem:[#allocation2] sm:$0x3f] %vm451_vm7, %v449_v43  ;;  %v2583_v43 = vld [vmem:[%s3438_s5 + $0x38] sm:$0xff]   ;;  %2397 = vmatprep.subr.bf16.mxu0 %v2582_v42 }
 0x184   :  { %504 = vst.msk [vmem:[#allocation2 + $0x8] sm:$0x3f] %vm429_vm6, %v502_v36  ;;  %2398 = vmatpush3.bf16.msra.mxu0 %v2583_v43 }
 0x185   :  { %v519_v44 = vpop.permute.xlu0 %518 }
 0x186   :  { %521 = vst.msk [vmem:[#allocation2 + $0x8] sm:$0x3f] %vm451_vm7, %v519_v44  ;;  %v2584_v44 = vld [vmem:[%s3438_s5 + $0x70] sm:$0xff]  }
 0x187   :  { %2399 = vmatprep.subr.bf16.mxu0 %v2584_v44 }
 0x189   :  { %v409_v45 = vpop.permute.xlu0 %408 }
 0x18a   :  { %412 = vst.msk [vmem:[#allocation2] sm:$0xc0] %vm411_vm8, %v409_v45 }
 0x18b   :  { %414 = vst.msk [vmem:[#allocation2 + $0x20] sm:$0xf] %vm413_vm9, %v409_v45  ;;  %v524_v46 = vpop.permute.xlu1 %523  ;;  %v2585_v45 = vld [vmem:[%s3438_s5 + $0x30] sm:$0xff]  }
 0x18c   :  { %436 = vst.msk [vmem:[#allocation2] sm:$0xc0] %vm435_vm10, %v433_v38  ;;  %2400 = vmatpush3.bf16.msra.mxu0 %v2585_v45 }
 0x18d   :  { %438 = vst.msk [vmem:[#allocation2 + $0x20] sm:$0xf] %vm437_vm11, %v433_v38  ;;  %v455_v47 = vpop.permute.xlu0 %454 }
 0x18e   :  { %458 = vst.msk [vmem:[#allocation2] sm:$0xc0] %vm457_vm12, %v455_v47 }
 0x18f   :  { %460 = vst.msk [vmem:[#allocation2 + $0x20] sm:$0xf] %vm459_vm13, %v455_v47  ;;  %v418_v48 = vpop.permute.xlu1 %417  ;;  %v2593_v47 = vld [vmem:[%s3438_s5 + $0xb8] sm:$0xff]  }
 0x190   :  { %421 = vst.msk [vmem:[#allocation2 + $0x20] sm:$0xf0] %vm420_vm14, %v418_v48 }
 0x191   :  { %423 = vst.msk [vmem:[#allocation2 + $0x40] sm:$0x3] %vm422_vm15, %v418_v48  ;;  %v602_v49 = vpop.permute.xlu0 %601  ;;  %v2586_v48 = vld [vmem:[%s3438_s5 + $0x68] sm:$0xff]  }
 0x192   :  { %444 = vst.msk [vmem:[#allocation2 + $0x20] sm:$0xf0] %vm443_vm0, %v441_v39  ;;  %2401 = vmatprep.subr.bf16.mxu0 %v2586_v48 }
 0x193   :  { %446 = vst.msk [vmem:[#allocation2 + $0x40] sm:$0x3] %vm445_vm1, %v441_v39  ;;  %v463_v50 = vpop.permute.xlu1 %462 }
 0x194   :  { %604 = vst.msk [vmem:[#allocation2 + $0x18] sm:$0x3f] %vm404_vm5, %v602_v49  ;;  %v2594_v49 = vld [vmem:[%s3438_s5 + $0xf0] sm:$0xff]  }
 0x195   :  { %466 = vst.msk [vmem:[#allocation2 + $0x20] sm:$0xf0] %vm465_vm2, %v463_v50  ;;  %v488_v51 = vpop.permute.xlu0 %487  ;;  %v648_v1 = vld [vmem:[#allocation2] sm:$0xff] }
 0x196   :  { %468 = vst.msk [vmem:[#allocation2 + $0x40] sm:$0x3] %vm467_vm3, %v463_v50  ;;  %v2596_v50 = vld [vmem:[%s3438_s5 + $0xb0] sm:$0xff]  }
 0x197   :  { %490 = vst.msk [vmem:[#allocation2 + $0x8] sm:$0xc0] %vm411_vm8, %v488_v51  ;;  %v495_v52 = vpop.permute.xlu1 %494 }
 0x198   :  { %491 = vst.msk [vmem:[#allocation2 + $0x28] sm:$0xf] %vm413_vm9, %v488_v51  ;;  %v2587_v51 = vld [vmem:[%s3438_s5 + $0x28] sm:$0xff]  }
 0x199   :  { %509 = vst.msk [vmem:[#allocation2 + $0x8] sm:$0xc0] %vm435_vm10, %v507_v37  ;;  %v530_v53 = vpop.permute.xlu0 %529  ;;  %2402 = vmatpush3.bf16.msra.mxu0 %v2587_v51  ;;  %v2612_v51 = vld [vmem:[%s3438_s5 + $0xc0] sm:$0xff]  }
 0x19a   :  { %510 = vst.msk [vmem:[#allocation2 + $0x28] sm:$0xf] %vm437_vm11, %v507_v37 }
 0x19b   :  { %526 = vst.msk [vmem:[#allocation2 + $0x8] sm:$0xc0] %vm457_vm12, %v524_v46  ;;  %v545_v54 = vpop.permute.xlu1 %544 }
 0x19c   :  { %527 = vst.msk [vmem:[#allocation2 + $0x28] sm:$0xf] %vm459_vm13, %v524_v46  ;;  %v652_v58 = vld [vmem:[#allocation2 + $0x20] sm:$0xff]  ;;  %v2592_v46 = vld [vmem:[%s3438_s5 + $0xf8] sm:$0xff]  }
 0x19d   :  { %497 = vst.msk [vmem:[#allocation2 + $0x28] sm:$0xf0] %vm420_vm14, %v495_v52  ;;  %v550_v55 = vpop.permute.xlu0 %549  ;;  %v660_v4 = vpack.c.bf16 %v652_v58, %v648_v1  ;;  %v656_v13 = vld [vmem:[#allocation2 + $0x40] sm:$0x3]  ;;  %v2595_v58 = vld [vmem:[%s3438_s5 + $0x50] sm:$0xff]  }
 0x19e   :  { %498 = vst.msk [vmem:[#allocation2 + $0x48] sm:$0x3] %vm422_vm15, %v495_v52  ;;  %v664_v19 = vpack.c.bf16 %v656_v13, %v656_v13  ;;  %v2598_v52 = vld [vmem:[%s3438_s5 + $0xe8] sm:$0xff]  }
 0x19f   :  { %515 = vst.msk [vmem:[#allocation2 + $0x28] sm:$0xf0] %vm443_vm0, %v513_v40  ;;  %v623_v57 = vpop.permute.xlu1 %622 }
 0x1a0   :  { %516 = vst.msk [vmem:[#allocation2 + $0x48] sm:$0x3] %vm445_vm1, %v513_v40 }
 0x1a1   :  { %532 = vst.msk [vmem:[#allocation2 + $0x28] sm:$0xf0] %vm465_vm2, %v530_v53  ;;  %v619_v59 = vpop.permute.xlu0 %618 }
 0x1a2   :  { %533 = vst.msk [vmem:[#allocation2 + $0x48] sm:$0x3] %vm467_vm3, %v530_v53  ;;  %v649_v60 = vld [vmem:[#allocation2 + $0x8] sm:$0xff]  ;;  %v2588_v53 = vld [vmem:[%s3438_s5 + $0x60] sm:$0xff]  }
 0x1a3   :  { %547 = vst.msk [vmem:[#allocation2 + $0x10] sm:$0x3f] %vm404_vm5, %v545_v54  ;;  %v562_v3 = vpop.permute.xlu1 %561  ;;  %v2589_v54 = vld [vmem:[%s3438_s5 + $0x20] sm:$0xff]   ;;  %2403 = vmatprep.subr.bf16.mxu0 %v2588_v53  ;;  %vm1044_vm5 = vcmask 1041920  }
 0x1a4   :  { %552 = vst.msk [vmem:[#allocation2 + $0x10] sm:$0xc0] %vm411_vm8, %v550_v55  ;;  %2404 = vmatpush3.bf16.msra.mxu0 %v2589_v54 }
 0x1a5   :  { %553 = vst.msk [vmem:[#allocation2 + $0x30] sm:$0xf] %vm413_vm9, %v550_v55  ;;  %v629_v8 = vpop.permute.xlu0 %628  ;;  %v2590_v55 = vld [vmem:[%s3438_s5 + $0x58] sm:$0xff]  }
 0x1a6   :  { %621 = vst.msk [vmem:[#allocation2 + $0x18] sm:$0x3f] %vm429_vm6, %v619_v59  ;;  %564 = vst.msk [vmem:[#allocation2 + $0x10] sm:$0x3f] %vm429_vm6, %v562_v3  ;;  %2405 = vmatprep.subr.bf16.mxu0 %v2590_v55  ;;  %v2597_v59 = vld [vmem:[%s3438_s5 + $0x10] sm:$0xff]   ;;  %vm2702_vm6 = vmmov 0  }
 0x1a7   :  { %v572_v10 = vpop.permute.xlu1 %571 }
 0x1a8   :  { %v653_v61 = vld [vmem:[#allocation2 + $0x28] sm:$0xff] }
 0x1a9   :  { %v657_v62 = vld [vmem:[#allocation2 + $0x48] sm:$0x3]  ;;  %v661_v0 = vpack.c.bf16 %v653_v61, %v649_v60  ;;  %v566_v15 = vpop.permute.xlu0 %565 }
 0x1aa   :  { %v665_v7 = vpack.c.bf16 %v657_v62, %v657_v62  ;;  %568 = vst.msk [vmem:[#allocation2 + $0x10] sm:$0xc0] %vm435_vm10, %v566_v15 }
 0x1ab   :  { %963 = vmatprep.mubr.bf16.mxu1 %v661_v0  ;;  %569 = vst.msk [vmem:[#allocation2 + $0x30] sm:$0xf] %vm437_vm11, %v566_v15  ;;  %v577_v18 = vpop.permute.xlu1 %576 }
 0x1ac   :  { %964 = vmatmul.mubr.bf16.vlgmr.msra.gmra.mxu1 %v660_v4  ;;  %579 = vst.msk [vmem:[#allocation2 + $0x10] sm:$0x3f] %vm451_vm7, %v577_v18  ;;  %v2600_v18 = vld [vmem:[%s3438_s5 + $0xe0] sm:$0xff]  }
 0x1ad   :  { %971 = vmatprep.mubr.bf16.mxu1 %v665_v7  ;;  %2370 = vmatpush3.bf16.msra.mxu1 %v2567_v2  ;;  %v634_v22 = vpop.permute.xlu0 %633 }
 0x1ae   :  { %2371 = vmatprep.subr.bf16.mxu1 %v2568_v5  ;;  %636 = vst.msk [vmem:[#allocation2 + $0x18] sm:$0x3f] %vm451_vm7, %v634_v22  ;;  %v2700_v5 = vmov 1983009808   ;;  %vm1424_vm7 = vcmask 523264  }
 0x1af   :  { %v607_v24 = vpop.permute.xlu1 %606  ;;  %v1034_v7 = vunpack.c.l.s4 %v2700_v5 }
 0x1b0   :  { %609 = vst.msk [vmem:[#allocation2 + $0x18] sm:$0xc0] %vm411_vm8, %v607_v24 }
 0x1b1   :  { %2372 = vmatpush3.bf16.msra.mxu1 %v2569_v9  ;;  %610 = vst.msk [vmem:[#allocation2 + $0x38] sm:$0xf] %vm413_vm9, %v607_v24  ;;  %v614_v27 = vpop.permute.xlu0 %613  ;;  %v2599_v9 = vld [vmem:[%s3438_s5 + $0xa8] sm:$0xff]   ;;  %v1035_v15 = vunpack.c.0.s8 %v1034_v7 }
 0x1b2   :  { %2373 = vmatprep.subr.bf16.mxu1 %v2570_v11  ;;  %625 = vst.msk [vmem:[#allocation2 + $0x18] sm:$0xc0] %vm435_vm10, %v623_v57  ;;  %v2154_v11 = vld [vmem:[%s3437_s4] ss:$0 sm:$0xff] }
 0x1b3   :  { %626 = vst.msk [vmem:[#allocation2 + $0x38] sm:$0xf] %vm437_vm11, %v623_v57  ;;  %v638_v29 = vpop.permute.xlu1 %637  ;;  %v2591_v57 = vld [vmem:[%s3438_s5 + $0x18] sm:$0xff]  }
 0x1b4   :  { %972 = vmatmul.mubr.bf16.gmra.mxu1 %v664_v19  ;;  %616 = vst.msk [vmem:[#allocation2 + $0x38] sm:$0xf0] %vm420_vm14, %v614_v27  ;;  %2406 = vmatpush3.bf16.msra.mxu0 %v2591_v57 }
 0x1b5   :  { %2374 = vmatpush3.bf16.msra.mxu1 %v2571_v16  ;;  %617 = vst.msk [vmem:[#allocation2 + $0x58] sm:$0x3] %vm422_vm15, %v614_v27  ;;  %v644_v31 = vpop.permute.xlu0 %643  ;;  %2407 = vmatprep.subr.bf16.mxu0 %v2595_v58  ;;  %v2601_v27 = vld [vmem:[%s3438_s5 + $0x48] sm:$0xff]   ;;  %v2613_v58 = vld [vmem:[%s3438_s5 + $0x80] sm:$0xff]  }
 0x1b6   :  { %2375 = vmatprep.subr.bf16.mxu1 %v2572_v20  ;;  %631 = vst.msk [vmem:[#allocation2 + $0x38] sm:$0xf0] %vm443_vm0, %v629_v8  ;;  %v2602_v20 = vld [vmem:[%s3438_s5 + $0xa0] sm:$0xff]  }
 0x1b7   :  { %632 = vst.msk [vmem:[#allocation2 + $0x58] sm:$0x3] %vm445_vm1, %v629_v8  ;;  %v557_v34 = vpop.permute.xlu1 %556  ;;  %v1036_v8 = vlaneseq }
 0x1b8   :  { %640 = vst.msk [vmem:[#allocation2 + $0x18] sm:$0xc0] %vm457_vm12, %v638_v29  ;;  %2408 = vmatpush3.bf16.msra.mxu0 %v2597_v59  ;;  %v2701_v59 = vmov 0.0  }
 0x1b9   :  { %2376 = vmatpush3.bf16.msra.mxu1 %v2573_v23  ;;  %641 = vst.msk [vmem:[#allocation2 + $0x38] sm:$0xf] %vm459_vm13, %v638_v29  ;;  %v581_v63 = vpop.permute.xlu0 %580  ;;  %v3195_v16 = vshrl.u32 %v1036_v8, 7  ;;  %2409 = vmatprep.subr.bf16.mxu0 %v2601_v27  ;;  %v2614_v8 = vld [vmem:[%s3438_s5 + $0x118] sm:$0xff]  }
 0x1ba   :  { %2377 = vmatprep.subr.bf16.mxu1 %v2574_v26  ;;  %646 = vst.msk [vmem:[#allocation2 + $0x38] sm:$0xf0] %vm465_vm2, %v644_v31  ;;  %v2624_v27 = vld [vmem:[%s3440_s7 + $0x6c] ss:$16 sps:$4 sm:$0xff]  }
 0x1bb   :  { %647 = vst.msk [vmem:[#allocation2 + $0x58] sm:$0x3] %vm467_vm3, %v644_v31  ;;  %v587_v21 = vpop.permute.xlu1 %586  ;;  %v2604_v31 = vld [vmem:[%s3438_s5 + $0xd8] sm:$0xff]  }
 0x1bc   :  { %559 = vst.msk [vmem:[#allocation2 + $0x30] sm:$0xf0] %vm420_vm14, %v557_v34 }
 0x1bd   :  { %2378 = vmatpush3.bf16.msra.mxu1 %v2575_v28  ;;  %560 = vst.msk [vmem:[#allocation2 + $0x50] sm:$0x3] %vm422_vm15, %v557_v34  ;;  %v2603_v28 = vld [vmem:[%s3438_s5 + $0x8] sm:$0xff]  }
 0x1be   :  { %2379 = vmatprep.subr.bf16.mxu1 %v2576_v30  ;;  %574 = vst.msk [vmem:[#allocation2 + $0x30] sm:$0xf0] %vm443_vm0, %v572_v10  ;;  %v3210_v30 = vsub.s32 %v1035_v15, %v3195_v16  ;;  %2410 = vmatpush3.bf16.msra.mxu0 %v2603_v28  ;;  %v2616_v15 = vld [vmem:[%s3438_s5 + $0x110] sm:$0xff]  }
 0x1bf   :  { %575 = vst.msk [vmem:[#allocation2 + $0x50] sm:$0x3] %vm445_vm1, %v572_v10  ;;  %v651_v17 = vld [vmem:[#allocation2 + $0x18] sm:$0xff]  ;;  %v2627_v28 = vld [vmem:[%s3440_s7 + $0x44] ss:$16 sps:$4 sm:$0xff]  }
 0x1c0   :  { %583 = vst.msk [vmem:[#allocation2 + $0x10] sm:$0xc0] %vm457_vm12, %v581_v63 }
 0x1c1   :  { %584 = vst.msk [vmem:[#allocation2 + $0x30] sm:$0xf] %vm459_vm13, %v581_v63  ;;  %2380 = vmatpush3.bf16.msra.mxu1 %v2577_v32  ;;  %v655_v25 = vld [vmem:[#allocation2 + $0x38] sm:$0xff]  ;;  %v2606_v63 = vld [vmem:[%s3438_s5 + $0xd0] sm:$0xff]  }
 0x1c2   :  { %2381 = vmatprep.subr.bf16.mxu1 %v2578_v14  ;;  %589 = vst.msk [vmem:[#allocation2 + $0x30] sm:$0xf0] %vm465_vm2, %v587_v21  ;;  %v663_v6 = vpack.c.bf16 %v655_v25, %v651_v17  ;;  %v659_v35 = vld [vmem:[#allocation2 + $0x58] sm:$0x3]  ;;  %v2609_v25 = vld [vmem:[%s3438_s5] sm:$0xff]  }
 0x1c3   :  { %590 = vst.msk [vmem:[#allocation2 + $0x50] sm:$0x3] %vm467_vm3, %v587_v21  ;;  %v667_v39 = vpack.c.bf16 %v659_v35, %v659_v35  ;;  %v2605_v14 = vld [vmem:[%s3438_s5 + $0x98] sm:$0xff]  }
 0x1c4   :  { %1011 = vmatprep.mubr.bf16.mxu1 %v663_v6 }
 0x1c5   :  { %2382 = vmatpush3.bf16.msra.mxu1 %v2579_v56  ;;  %v2607_v56 = vld [vmem:[%s3438_s5 + $0x40] sm:$0xff]  }
 0x1c6   :  { %2383 = vmatprep.subr.bf16.mxu1 %v2580_v12  ;;  %2411 = vmatprep.subr.bf16.mxu0 %v2607_v56  ;;  %v2639_v56 = vld [vmem:[%s3440_s7 + $0x4] ss:$16 sps:$4 sm:$0xff]  }
 0x1c7   :  { %v650_v36 = vld [vmem:[#allocation2 + $0x10] sm:$0xff]  ;;  %2412 = vmatpush3.bf16.msra.mxu0 %v2609_v25  ;;  %v2703_v25 = vmov 0  }
 0x1c8   :  { %2490 = vmatprep.subr.bf16.mxu0 %v2701_v59 }
 0x1c9   :  { %2384 = vmatpush3.bf16.msra.mxu1 %v2581_v33  ;;  %v654_v37 = vld [vmem:[#allocation2 + $0x30] sm:$0xff] }
 0x1ca   :  { %v662_v38 = vpack.c.bf16 %v654_v37, %v650_v36  ;;  %v658_v40 = vld [vmem:[#allocation2 + $0x50] sm:$0x3]  ;;  %2419 = vmatprep.subr.bf16.mxu1 %v2592_v46  ;;  %v2611_v46 = vld [vmem:[%s3438_s5 + $0x88] sm:$0xff]  }
 0x1cb   :  { %v666_v41 = vpack.c.bf16 %v658_v40, %v658_v40  ;;  %v2608_v33 = vld [vmem:[%s3438_s5 + $0x90] sm:$0xff]   ;;  %v2610_v40 = vld [vmem:[%s3438_s5 + $0xc8] sm:$0xff]  }
 0x1cc   :  { %1012 = vmatmul.mubr.bf16.vlgmr.msra.gmra.mxu1 %v662_v38 }
 0x1cd   :  { %1019 = vmatprep.mubr.bf16.mxu1 %v667_v39  ;;  %2420 = vmatpush3.bf16.msra.mxu1 %v2593_v47 }
 0x1ce   :  { %2421 = vmatprep.subr.bf16.mxu1 %v2594_v49 }
 0x1d1   :  { %2422 = vmatpush3.bf16.msra.mxu1 %v2596_v50 }
 0x1d2   :  { %2423 = vmatprep.subr.bf16.mxu1 %v2598_v52 }
 0x1d4   :  { %1020 = vmatmul.mubr.bf16.gmra.mxu1 %v666_v41 }
 0x1d5   :  { %2424 = vmatpush3.bf16.msra.mxu1 %v2599_v9 }
 0x1d6   :  { %2425 = vmatprep.subr.bf16.mxu1 %v2600_v18  ;;  %v2617_v18 = vld [vmem:[%s3438_s5 + $0x108] sm:$0xff]  }
 0x1d9   :  { %2426 = vmatpush3.bf16.msra.mxu1 %v2602_v20 }
 0x1da   :  { %2427 = vmatprep.subr.bf16.mxu1 %v2604_v31  ;;  %v2628_v31 = vld [vmem:[%s3440_s7 + $0x48] ss:$16 sps:$4 sm:$0xff]  }
 0x1dd   :  { %2428 = vmatpush3.bf16.msra.mxu1 %v2605_v14  ;;  %v2631_v14 = vld [vmem:[%s3440_s7 + $0x20] ss:$16 sps:$4 sm:$0xff]  }
 0x1de   :  { %2429 = vmatprep.subr.bf16.mxu1 %v2606_v63  ;;  %v2634_v63 = vld [vmem:[%s3440_s7 + $0x28] ss:$16 sps:$4 sm:$0xff]  }
 0x1e1   :  { %2430 = vmatpush3.bf16.msra.mxu1 %v2608_v33  ;;  %v2644_v33 = vld [vmem:[%s3442_s9 + $0xf8] sm:$0xff]  }
 0x1e2   :  { %2431 = vmatprep.subr.bf16.mxu1 %v2610_v40 }
 0x1e5   :  { %2432 = vmatpush3.bf16.msra.mxu1 %v2611_v46 }
 0x1e6   :  { %2433 = vmatprep.subr.bf16.mxu1 %v2612_v51 }
 0x1e9   :  { %2434 = vmatpush3.bf16.msra.mxu1 %v2613_v58 }
 0x26c   :  { %v2357_v60 = vpop.f32.mrf.mxu1 }
 0x26e   :  { %v2358_v61 = vpop.f32.mrf.mxu1 }
 0x26f   :  { %v2359_v10 = vadd.f32 %v2358_v61, %v2357_v60 }
 0x270   :  { %v2360_v62 = vpop.f32.mrf.mxu1 }
 0x271   :  { %v966_v22 = vadd.f32 %v2359_v10, %v2154_v11 }
 0x272   :  { %v2361_v0 = vpop.f32.mrf.mxu1 }
 0x273   :  { %v2362_v23 = vadd.f32 %v2361_v0, %v2360_v62 }
 0x274   :  { %v2363_v1 = vpop.f32.mrf.mxu1 }
 0x275   :  { %v969_v21 = vadd.f32 %v2362_v23, %v2154_v11  ;;  %v2619_v23 = vld [vmem:[%s3440_s7 + $0x60] ss:$16 sps:$4 sm:$0xff]  }
 0x276   :  { %v2364_v2 = vpop.f32.mrf.mxu1 }
 0x277   :  { %v2365_v32 = vadd.f32 %v2364_v2, %v2363_v1 }
 0x278   :  { %v2366_v3 = vpop.f32.mrf.mxu1 }
 0x279   :  { %v974_v38 = vadd.f32 %v2365_v32, %v2154_v11  ;;  %v2633_v32 = vld [vmem:[%s3440_s7 + $0x24] ss:$16 sps:$4 sm:$0xff]  }
 0x27a   :  { %v2367_v4 = vpop.f32.mrf.mxu1 }
 0x28c   :  { %v2385_v13 = vpop.f32.mrf.mxu1 }
 0x28e   :  { %v2386_v19 = vpop.f32.mrf.mxu1 }
 0x28f   :  { %v2387_v24 = vadd.f32 %v2386_v19, %v2385_v13  ;;  %v2618_v19 = vld [vmem:[%s3438_s5 + $0x100] sm:$0xff]  }
 0x290   :  { %v2388_v26 = vpop.f32.mrf.mxu1 }
 0x291   :  { %v1014_v29 = vadd.f32 %v2387_v24, %v966_v22  ;;  %v2621_v24 = vld [vmem:[%s3440_s7 + $0x64] ss:$16 sps:$4 sm:$0xff]  }
 0x292   :  { %v2389_v34 = vpop.f32.mrf.mxu1  ;;  %1681 = vmatprep.subr.bf16.mxu1 %v2621_v24  ;;  %v2669_v24 = vld [vmem:[%s3442_s9 + $0x8] sm:$0xff]  }
 0x293   :  { %v1027_v12 = vmax.f32 %v1014_v29, 0.0  ;;  %v2390_v17 = vadd.f32 %v2389_v34, %v2388_v26  ;;  %v2622_v26 = vld [vmem:[%s3440_s7 + $0x68] ss:$16 sps:$4 sm:$0xff]   ;;  %v2630_v29 = vld [vmem:[%s3440_s7 + $0x4c] ss:$16 sps:$4 sm:$0xff]  }
 0x294   :  { %v2391_v6 = vpop.f32.mrf.mxu1  ;;  %v2636_v34 = vld [vmem:[%s3440_s7 + $0x2c] ss:$16 sps:$4 sm:$0xff]  }
 0x295   :  { %v1046_v35 = vcombine.high %v1027_v12, %v1027_v12  ;;  %v1017_v36 = vadd.f32 %v2390_v17, %v969_v21  ;;  %1031 = vst.msk [vmem:[#allocation3] sm:$0x3] %vm1030_vm4, %v1027_v12  ;;  %v1039_v37 = vrot.slane %v1027_v12, %v3210_v30  ;;  %v2642_v21 = vld [vmem:[%s3440_s7 + $0xc] ss:$16 sps:$4 sm:$0xff]   ;;  %v2637_v12 = vld [vmem:[%s3440_s7] ss:$16 sps:$4 sm:$0xff]  }
 0x296   :  { %v2392_v39 = vpop.f32.mrf.mxu1  ;;  %v2640_v17 = vld [vmem:[%s3440_s7 + $0x8] ss:$16 sps:$4 sm:$0xff]  }
 0x297   :  { %v1028_v41 = vmax.f32 %v1017_v36, 0.0  ;;  %v2393_v42 = vadd.f32 %v2392_v39, %v2391_v6  ;;  %v1040_v43 = vcombine.high %v1039_v37, %v1039_v37  ;;  %v1053_v44 = vrot.slane %v1046_v35, %v3210_v30  ;;  %v2643_v6 = vld [vmem:[%s3442_s9 + $0x78] sm:$0xff]  }
 0x298   :  { %v2394_v45 = vpop.f32.mrf.mxu1 }
 0x299   :  { %v1075_v47 = vcombine.high %v1028_v41, %v1028_v41  ;;  %v1022_v48 = vadd.f32 %v2393_v42, %v974_v38  ;;  %1061 = vst.msk [vmem:[#allocation3 + $0x4] sm:$0x3] %vm1030_vm4, %v1028_v41  ;;  %1041 = vrot.lane.b32.xlu0 %v1040_v43, %s2697_s0  ;;  %v1056_v49 = vcombine.high %v1053_v44, %v1053_v44  ;;  %1055 = vst.msk [vmem:[#allocation3 + $0x2] sm:$0x3] %vm1030_vm4, %v1053_v44  ;;  %v2188_v43 = vld [vmem:[%s3439_s6] ss:$0 sm:$0xff] }
 0x29a   :  { %v1069_v50 = vrot.slane %v1028_v41, %v3210_v30  ;;  %v2395_v52 = vpop.f32.mrf.mxu1 }
 0x29b   :  { %v1029_v53 = vmax.f32 %v1022_v48, 0.0  ;;  %1057 = vrot.lane.b32.xlu1 %v1056_v49, %s2697_s0  ;;  %v1082_v55 = vrot.slane %v1075_v47, %v3210_v30 }
 0x29c   :  { %v1070_v54 = vcombine.high %v1069_v50, %v1069_v50 }
 0x29d   :  { %1090 = vst.msk [vmem:[#allocation3 + $0x8] sm:$0x3] %vm1030_vm4, %v1029_v53  ;;  %v1085_v57 = vcombine.high %v1082_v55, %v1082_v55  ;;  %1084 = vst.msk [vmem:[#allocation3 + $0x6] sm:$0x3] %vm1030_vm4, %v1082_v55  ;;  %v2645_v55 = vld [vmem:[%s3442_s9 + $0x38] sm:$0xff]  }
 0x29e   :  { %1071 = vrot.lane.b32.xlu0 %v1070_v54, %s2697_s0 }
 0x29f   :  { %1086 = vrot.lane.b32.xlu1 %v1085_v57, %s2697_s0  ;;  %v2646_v57 = vld [vmem:[%s3442_s9 + $0xb8] sm:$0xff]  }
 0x2a4   :  { %v2187_v20 = vld.sshfl [vmem:[#allocation3 + $0x8] sm:$0x3 pattern:$0x76325410] }
 0x2a5   :  { %v1128_v22 = vpack.c.bf16 %v2187_v20, %v2187_v20  ;;  %v2666_v20 = vld [vmem:[%s3442_s9 + $0x90] sm:$0xff]  }
 0x30b   :  { %v1042_v60 = vpop.permute.xlu0 %1041 }
 0x30c   :  { %1045 = vst.msk [vmem:[#allocation3] sm:$0x3] %vm1044_vm5, %v1042_v60  ;;  %v2648_v60 = vld [vmem:[%s3442_s9 + $0xf0] sm:$0xff]  }
 0x30d   :  { %v1058_v61 = vpop.permute.xlu1 %1057 }
 0x30e   :  { %1060 = vst.msk [vmem:[#allocation3 + $0x2] sm:$0x3] %vm1044_vm5, %v1058_v61  ;;  %v2649_v61 = vld [vmem:[%s3442_s9 + $0x30] sm:$0xff]  }
 0x310   :  { %v1072_v62 = vpop.permute.xlu0 %1071 }
 0x311   :  { %1074 = vst.msk [vmem:[#allocation3 + $0x4] sm:$0x3] %vm1044_vm5, %v1072_v62  ;;  %v1087_v0 = vpop.permute.xlu1 %1086  ;;  %v2650_v62 = vld [vmem:[%s3442_s9 + $0xb0] sm:$0xff]  }
 0x312   :  { %1089 = vst.msk [vmem:[#allocation3 + $0x6] sm:$0x3] %vm1044_vm5, %v1087_v0  ;;  %v2651_v0 = vld [vmem:[%s3442_s9 + $0x68] sm:$0xff]  }
 0x319   :  { %v1091_v1 = vld [vmem:[#allocation3] sm:$0xff] }
 0x31a   :  { %v1102_v2 = vrot.slane %v1091_v1, %v3210_v30  ;;  %v1095_v3 = vcombine.high %v1091_v1, %v1091_v1  ;;  %v2652_v1 = vld [vmem:[%s3442_s9 + $0xe8] sm:$0xff]  }
 0x31c   :  { %v1110_v4 = vcombine.high %v1102_v2, %v1102_v2  ;;  %v1109_v5 = vrot.slane %v1095_v3, %v3210_v30  ;;  %v1124_v10 = vpack.c.bf16 %v1102_v2, %v1102_v2  ;;  %v2625_v30 = vld [vmem:[%s3440_s7 + $0x40] ss:$16 sps:$4 sm:$0xff]   ;;  %v2653_v2 = vld [vmem:[%s3442_s9 + $0x28] sm:$0xff]  }
 0x31d   :  { %v2654_v3 = vld [vmem:[%s3442_s9 + $0xa8] sm:$0xff]  }
 0x31e   :  { %v1125_v7 = vpack.c.bf16 %v1110_v4, %v1110_v4  ;;  %v1111_v9 = vcombine.high %v1109_v5, %v1109_v5  ;;  %v1126_v13 = vpack.c.bf16 %v1109_v5, %v1109_v5  ;;  %v2655_v4 = vld [vmem:[%s3442_s9 + $0x60] sm:$0xff]  }
 0x31f   :  { %v2656_v5 = vld [vmem:[%s3442_s9 + $0xe0] sm:$0xff]  }
 0x320   :  { %1460 = vmatprep.mubr.bf16.mxu0 %v1125_v7  ;;  %v1127_v11 = vpack.c.bf16 %v1111_v9, %v1111_v9  ;;  %v2657_v7 = vld [vmem:[%s3442_s9 + $0x20] sm:$0xff]   ;;  %v2659_v9 = vld [vmem:[%s3442_s9 + $0x58] sm:$0xff]  }
 0x321   :  { %1461 = vmatmul.mubr.bf16.vlgmr.msra.gmra.mxu0 %v1124_v10  ;;  %v2660_v10 = vld [vmem:[%s3442_s9 + $0xd8] sm:$0xff]  }
 0x322   :  { %2491 = vmatpush3.bf16.msra.mxu0 %v2614_v8  ;;  %1500 = vmatprep.mubr.bf16.mxu1 %v1127_v11  ;;  %v2658_v8 = vld [vmem:[%s3442_s9 + $0xa0] sm:$0xff]   ;;  %v2661_v11 = vld [vmem:[%s3442_s9 + $0x18] sm:$0xff]  }
 0x323   :  { %1501 = vmatmul.mubr.bf16.vlgmr.msra.gmra.mxu1 %v1126_v13  ;;  %2492 = vmatprep.subr.bf16.mxu0 %v2701_v59  ;;  %v2662_v13 = vld [vmem:[%s3442_s9 + $0x98] sm:$0xff]  }
 0x324   :  { %2498 = vmatprep.mubr.msk.bf16.mxu0 %vm2702_vm6, %v2701_v59  ;;  %1682 = vmatpush1.bf16.msra.mxu1 %v2619_v23  ;;  %v2668_v23 = vld [vmem:[%s3442_s9 + $0xc8] sm:$0xff]  }
 0x325   :  { %1683 = vmatprep.subr.bf16.mxu1 %v2627_v28  ;;  %1705 = vmatprep.mubr.bf16.mxu1 %v2703_v25  ;;  %v2672_v28 = vld [vmem:[%s3442_s9 + $0xc0] sm:$0xff]  }
 0x326   :  { %2493 = vmatpush3.bf16.msra.mxu0 %v2616_v15  ;;  %v2663_v15 = vld [vmem:[%s3442_s9 + $0x50] sm:$0xff]  }
 0x327   :  { %2494 = vmatprep.subr.bf16.mxu0 %v2701_v59 }
 0x328   :  { %1684 = vmatpush1.bf16.msra.mxu1 %v2625_v30  ;;  %v2674_v30 = vld [vmem:[%s3442_s9 + $0x80] sm:$0xff]  }
 0x329   :  { %1685 = vmatprep.subr.bf16.mxu1 %v2633_v32  ;;  %v1580_v32 = vsub.s32 2, %v3195_v16 }
 0x32a   :  { %2495 = vmatpush3.bf16.msra.mxu0 %v2617_v18  ;;  %v2664_v18 = vld [vmem:[%s3442_s9 + $0xd0] sm:$0xff]  }
 0x32b   :  { %2496 = vmatprep.subr.bf16.mxu0 %v2701_v59  ;;  %v2647_v59 = vld [vmem:[%s3442_s9 + $0x70] sm:$0xff]  }
 0x32c   :  { %1686 = vmatpush1.bf16.msra.mxu1 %v2631_v14  ;;  %v1576_v14 = vsub.s32 1, %v3195_v16 }
 0x32d   :  { %1687 = vmatprep.subr.bf16.mxu1 %v2639_v56 }
 0x32e   :  { %2497 = vmatpush3.bf16.msra.mxu0 %v2618_v19  ;;  %v2665_v19 = vld [vmem:[%s3442_s9 + $0x10] sm:$0xff]  }
 0x32f   :  { %1722 = vmatprep.subr.bf16.mxu0 %v2624_v27  ;;  %v2671_v27 = vld [vmem:[%s3442_s9 + $0x40] sm:$0xff]  }
 0x330   :  { %1688 = vmatpush1.bf16.msra.mxu1 %v2637_v12 }
 0x331   :  { %2499 = vmatmul.mubr.msk.bf16.vlgmr.msra.gmra.mxu0 %vm1424_vm7, %v1128_v22  ;;  %2446 = vmatprep.subr.bf16.mxu1 %v2643_v6  ;;  %v2667_v22 = vld [vmem:[%s3442_s9 + $0x48] sm:$0xff]  }
 0x332   :  { %1723 = vmatpush1.bf16.msra.mxu0 %v2622_v26  ;;  %1746 = vmatprep.mubr.bf16.mxu0 %v2703_v25  ;;  %v2670_v26 = vld [vmem:[%s3442_s9 + $0x88] sm:$0xff]  }
 0x333   :  { %1724 = vmatprep.subr.bf16.mxu0 %v2630_v29  ;;  %v2673_v29 = vld [vmem:[%s3442_s9] sm:$0xff]  }
 0x336   :  { %1725 = vmatpush1.bf16.msra.mxu0 %v2628_v31  ;;  %v1572_v31 = vsub.s32 0, %v3195_v16 }
 0x337   :  { %1726 = vmatprep.subr.bf16.mxu0 %v2636_v34  ;;  %v1568_v34 = vld [vmem:[%s3441_s8] sm:$0xf] }
 0x338   :  { %v1573_v56 = vrot.slane %v1568_v34, %v1572_v31  ;;  %v1577_v12 = vrot.slane %v1568_v34, %v1576_v14 }
 0x33a   :  { %1727 = vmatpush1.bf16.msra.mxu0 %v2634_v63  ;;  %v1584_v63 = vsub.s32 3, %v3195_v16 }
 0x33b   :  { %1728 = vmatprep.subr.bf16.mxu0 %v2642_v21  ;;  %v1581_v21 = vrot.slane %v1568_v34, %v1580_v32 }
 0x33e   :  { %1729 = vmatpush1.bf16.msra.mxu0 %v2640_v17  ;;  %v1585_v17 = vrot.slane %v1568_v34, %v1584_v63 }
 0x33f   :  { %2468 = vmatprep.subr.bf16.mxu0 %v2644_v33 }
 0x3e1   :  { %v2413_v35 = vpop.f32.mrf.mxu0 }
 0x3e3   :  { %v2414_v36 = vpop.f32.mrf.mxu0  ;;  %v2435_v37 = vpop.f32.mrf.mxu1 }
 0x3e4   :  { %v2415_v42 = vadd.f32 %v2414_v36, %v2413_v35 }
 0x3e5   :  { %v2416_v38 = vpop.f32.mrf.mxu0  ;;  %v2436_v39 = vpop.f32.mrf.mxu1 }
 0x3e6   :  { %v1463_v45 = vadd.f32 %v2415_v42, %v2188_v43  ;;  %v2437_v46 = vadd.f32 %v2436_v39, %v2435_v37 }
 0x3e7   :  { %v2417_v40 = vpop.f32.mrf.mxu0  ;;  %v2438_v41 = vpop.f32.mrf.mxu1 }
 0x3e8   :  { %v1503_v47 = vadd.f32 %v2437_v46, %v1463_v45 }
 0x3e9   :  { %v2439_v44 = vpop.f32.mrf.mxu1 }
 0x3f1   :  { %v1542_v48 = vpop.f32.mrf.mxu0 }
 0x3f2   :  { %v1543_v49 = vadd.f32 %v1542_v48, %v1503_v47 }
 0x3f3   :  { %v2500_v50 = vpop.f32.mrf.mxu0 }
 0x3f4   :  { %v1548_v51 = vmax.f32 %v1543_v49, 0.0 }
 0x3f5   :  { %v1545_v52 = vpop.f32.mrf.mxu0 }
 0x3f6   :  { %1549 = vst.msk [vmem:[#allocation4] sm:$0x3] %vm1030_vm4, %v1548_v51 }
 0x3f7   :  { %v2501_v53 = vpop.f32.mrf.mxu0 }
 0x3f8   :  { %v2244_v53 = vld [vmem:[%s3443_s10] ss:$0 sm:$0xff] }
 0x3fd   :  { %v1550_v54 = vld [vmem:[#allocation4] sm:$0x3] }
 0x3fe   :  { %v1551_v58 = vpack.c.bf16 %v1550_v54, %v1550_v54 }
 0x400   :  { %2242 = vmatmul.mubr.msk.bf16.vlgmr.msra.gmra.mxu1 %vm1424_vm7, %v1551_v58  ;;  %2243 = vmatmul.mubr.msk.bf16.vlgmr.msra.gmra.mxu0 %vm1424_vm7, %v1551_v58 }
 0x401   :  { %2447 = vmatpush3.bf16.msra.mxu1 %v2645_v55  ;;  %2469 = vmatpush3.bf16.msra.mxu0 %v2646_v57 }
 0x402   :  { %2448 = vmatprep.subr.bf16.mxu1 %v2647_v59  ;;  %2470 = vmatprep.subr.bf16.mxu0 %v2648_v60 }
 0x405   :  { %2449 = vmatpush3.bf16.msra.mxu1 %v2649_v61  ;;  %2471 = vmatpush3.bf16.msra.mxu0 %v2650_v62 }
 0x406   :  { %2450 = vmatprep.subr.bf16.mxu1 %v2651_v0  ;;  %2472 = vmatprep.subr.bf16.mxu0 %v2652_v1 }
 0x409   :  { %2451 = vmatpush3.bf16.msra.mxu1 %v2653_v2  ;;  %2473 = vmatpush3.bf16.msra.mxu0 %v2654_v3 }
 0x40a   :  { %2452 = vmatprep.subr.bf16.mxu1 %v2655_v4  ;;  %2474 = vmatprep.subr.bf16.mxu0 %v2656_v5 }
 0x40d   :  { %2453 = vmatpush3.bf16.msra.mxu1 %v2657_v7  ;;  %2475 = vmatpush3.bf16.msra.mxu0 %v2658_v8 }
 0x40e   :  { %2454 = vmatprep.subr.bf16.mxu1 %v2659_v9  ;;  %2476 = vmatprep.subr.bf16.mxu0 %v2660_v10 }
 0x411   :  { %2455 = vmatpush3.bf16.msra.mxu1 %v2661_v11  ;;  %2477 = vmatpush3.bf16.msra.mxu0 %v2662_v13 }
 0x412   :  { %2456 = vmatprep.subr.bf16.mxu1 %v2663_v15  ;;  %2478 = vmatprep.subr.bf16.mxu0 %v2664_v18 }
 0x415   :  { %2457 = vmatpush3.bf16.msra.mxu1 %v2665_v19  ;;  %2479 = vmatpush3.bf16.msra.mxu0 %v2666_v20 }
 0x416   :  { %2458 = vmatprep.subr.bf16.mxu1 %v2667_v22  ;;  %2480 = vmatprep.subr.bf16.mxu0 %v2668_v23 }
 0x419   :  { %2459 = vmatpush3.bf16.msra.mxu1 %v2669_v24  ;;  %2481 = vmatpush3.bf16.msra.mxu0 %v2670_v26 }
 0x41a   :  { %2460 = vmatprep.subr.bf16.mxu1 %v2671_v27  ;;  %2482 = vmatprep.subr.bf16.mxu0 %v2672_v28 }
 0x41d   :  { %2461 = vmatpush3.bf16.msra.mxu1 %v2673_v29  ;;  %2483 = vmatpush3.bf16.msra.mxu0 %v2674_v30 }
 0x4c0   :  { %v1707_v25 = vpop.f32.mrf.mxu1  ;;  %v1748_v6 = vpop.f32.mrf.mxu0 }
 0x4c1   :  { %v1708_v33 = vadd.f32 %v1707_v25, %v1573_v56  ;;  %v1749_v35 = vadd.f32 %v1748_v6, %v1581_v21 }
 0x4c2   :  { %v1709_v36 = vpop.f32.mrf.mxu1  ;;  %v1750_v37 = vpop.f32.mrf.mxu0 }
 0x4c3   :  { %v1710_v38 = vadd.f32 %v1709_v36, %v1577_v12  ;;  %v1751_v39 = vadd.f32 %v1750_v37, %v1585_v17  ;;  %v1755_v40 = vmax.f32 %v1708_v33, 0.0  ;;  %v1757_v41 = vmax.f32 %v1749_v35, 0.0 }
 0x4c4   :  { %v1711_v42 = vpop.f32.mrf.mxu1  ;;  %v1752_v43 = vpop.f32.mrf.mxu0 }
 0x4c5   :  { %v1756_v44 = vmax.f32 %v1710_v38, 0.0  ;;  %v1758_v45 = vmax.f32 %v1751_v39, 0.0  ;;  %v1759_v49 = vpack.c.bf16 %v1755_v40, %v1755_v40  ;;  %v1761_v50 = vpack.c.bf16 %v1757_v41, %v1757_v41 }
 0x4c6   :  { %v1712_v46 = vpop.f32.mrf.mxu1  ;;  %v1753_v16 = vpop.f32.mrf.mxu0 }
 0x4c7   :  { %v1760_v47 = vpack.c.bf16 %v1756_v44, %v1756_v44  ;;  %v1762_v48 = vpack.c.bf16 %v1758_v45, %v1758_v45 }
 0x4c9   :  { %2058 = vmatprep.mubr.bf16.mxu1 %v1760_v47  ;;  %2098 = vmatprep.mubr.bf16.mxu0 %v1762_v48 }
 0x4ca   :  { %2059 = vmatmul.mubr.bf16.vlgmr.msra.gmra.mxu1 %v1759_v49  ;;  %2099 = vmatmul.mubr.bf16.vlgmr.msra.gmra.mxu0 %v1761_v50 }
 0x58a   :  { %v2462_v51 = vpop.f32.mrf.mxu1  ;;  %v2484_v52 = vpop.f32.mrf.mxu0 }
 0x58c   :  { %v2463_v54 = vpop.f32.mrf.mxu1  ;;  %v2485_v55 = vpop.f32.mrf.mxu0 }
 0x58d   :  { %v2464_v57 = vadd.f32 %v2463_v54, %v2462_v51  ;;  %v2486_v61 = vadd.f32 %v2485_v55, %v2484_v52 }
 0x58e   :  { %v2465_v58 = vpop.f32.mrf.mxu1  ;;  %v2487_v59 = vpop.f32.mrf.mxu0 }
 0x58f   :  { %v2061_v60 = vadd.f32 %v2464_v57, %v2244_v53 }
 0x590   :  { %v2466_v62 = vpop.f32.mrf.mxu1  ;;  %v2488_v0 = vpop.f32.mrf.mxu0 }
 0x591   :  { %v2101_v1 = vadd.f32 %v2486_v61, %v2061_v60 }
 0x593   :  { %2106 = vst [vmem:[#allocation5] sm:$0x3] %v2101_v1 }
 0x594   :  { %2686 = shalt.err (!%p2683_p4)
}
 0x595   :  { %2116 = dma.vmem_to_hbm [thread:$0]  %s2114_s26, 32, %s3444_s11, [#allocation6]  }
 0x596   :  { %2695 = dma.done.wait [#allocation6], 32  }
 0x597   :  { %2696 = vsyncadd [#allocation6], 4294967264 }
 0x598   :  { %2120 = vsyncpa [#allocation6], 1 }

</bundles_post_ra>
